<compile_context>
chip_gen: v6e
topology: v6e:2x2x1
jax: 0.10.0
libtpu: 0.0.40
codegen_flags: <defaults>
</compile_context>

<pallas_src>
import jax
import jax.numpy as jnp
from jax import lax
from jax.experimental import pallas as pl
from jax.experimental.pallas import tpu as pltpu

# Small, module-consistent sizes.
VOCAB = 16     # len(vocab)
EMB = 32       # embedding_dim
HID = 32       # lstm_hidden
LAYERS = 2     # num_lstm_layers
BATCH = 2
SEQ = 8
PAD_IDX = 0
BN_EPS = 1e-5
LEAKY_SLOPE = 0.01           # nn.LeakyReLU default
GATES = 4 * HID              # 128 -> exactly one lane width on every TPU gen
VPAD = 128                   # lane-dense padded head width
NEG_BIG = -1e30              # padded-logit value (exp() underflows to 0 in f32)

assert EMB == HID, "stacked W_ih layout assumes equal per-layer input widths"
assert LAYERS == 2, "kernel is wavefronted for exactly two LSTM layers"
assert GATES == VPAD == 128


# --------------------------------------------------------------------------
# Single fused kernel.  7 VMEM operands, 3 outputs, 1 scratch; no grid.
# --------------------------------------------------------------------------
def _fused_forward_kernel(ids_ref, xp0tab_ref, whh0_ref, wcat1_ref, hc0_ref,
                          aux_ref, wout_ref,
                          out_ref, hT_ref, cT_ref,
                          y_scr):
    # ---- Embedding + layer-0 input projection + layer-0 bias, all folded into
    #      one one-hot (S*B,V) @ (V,4H) MXU matmul.  Rows are time-major
    #      (r = t*B + b).
    ids = ids_ref[...]                                              # (S*B, 1) int32
    vocab_iota = lax.broadcasted_iota(jnp.int32, (SEQ * BATCH, VOCAB), 1)
    onehot = jnp.where(ids == vocab_iota, 1.0, 0.0)                 # (S*B, V)
    xp0 = jnp.dot(onehot, xp0tab_ref[...],
                  preferred_element_type=jnp.float32)               # (S*B, 4H)

    whh0 = whh0_ref[...]                                            # (H, 4H)
    wcat1 = wcat1_ref[...]                                          # (2H, 4H) = [Wih1^T ; Whh1^T]
    aux = aux_ref[...]                                              # (4, 128) packed small operands
    bias1 = aux[0:1, :]                                             # (1, 4H)   combined layer-1 bias
    b_out = aux[1:2, :]                                             # (1, VPAD) padded head bias
    bn_s = aux[2:3, 0:HID]                                          # (1, H)    folded BN scale
    bn_t = aux[3:4, 0:HID]                                          # (1, H)    folded BN shift

    # Lane mask picking the cell (g) gate inside the [i|f|g|o] 128-lane vector.
    lane = lax.broadcasted_iota(jnp.int32, (BATCH, GATES), 1)
    is_g = (lane >= 2 * HID) & (lane < 3 * HID)

    def lstm_cell(gates, c):
        sig = jax.nn.sigmoid(gates)                                 # full-vreg EUP
        tnh = jnp.tanh(gates)                                       # full-vreg EUP
        act = jnp.where(is_g, tnh, sig)                             # [i | f | g | o]
        c_new = (act[:, HID:2 * HID] * c
                 + act[:, 0:HID] * act[:, 2 * HID:3 * HID])
        h_new = act[:, 3 * HID:4 * HID] * jnp.tanh(c_new)
        return h_new, c_new

    h_l0 = jnp.broadcast_to(hc0_ref[pl.ds(0, 1), :], (BATCH, HID))
    h_l1 = jnp.broadcast_to(hc0_ref[pl.ds(1, 1), :], (BATCH, HID))
    c_l0 = jnp.broadcast_to(hc0_ref[pl.ds(2, 1), :], (BATCH, HID))
    c_l1 = jnp.broadcast_to(hc0_ref[pl.ds(3, 1), :], (BATCH, HID))

    # ---- Wavefronted 2-layer recurrence: one unrolled t-loop, layer-1 step t
    #      as a single fused (B,2H)@(2H,4H) matmul on [x1_t | h1].  Adjacent
    #      steps of the two layers are independent, so the statically unrolled
    #      schedule overlaps them.
    for t in range(SEQ):                                            # static unroll (S=8)
        g0 = xp0[t * BATCH:(t + 1) * BATCH, :] + jnp.dot(
            h_l0, whh0, preferred_element_type=jnp.float32)
        h_l0, c_l0 = lstm_cell(g0, c_l0)

        xin1 = jnp.concatenate([h_l0, h_l1], axis=1)                # (B, 2H)
        g1 = jnp.dot(xin1, wcat1, preferred_element_type=jnp.float32) + bias1
        h_l1, c_l1 = lstm_cell(g1, c_l1)

        y_scr[pl.ds(t * BATCH, BATCH), :] = h_l1                    # time-major store

    hT_ref[0] = h_l0
    hT_ref[1] = h_l1
    cT_ref[0] = c_l0
    cT_ref[1] = c_l1

    # ---- Head on all S*B rows at once (row order irrelevant for per-row ops):
    #      folded BatchNorm (scale/shift, running stats) + LeakyReLU + Linear
    #      (lane-padded to 128) + exact softmax.
    y = y_scr[...]                                                  # (S*B, H) time-major
    y_bn = y * bn_s + bn_t
    a = jnp.where(y_bn >= 0, y_bn, LEAKY_SLOPE * y_bn)              # LeakyReLU
    # TODO(synk): nn.Dropout is identity here (eval / inference semantics).
    logits = jnp.dot(a, wout_ref[...],
                     preferred_element_type=jnp.float32) + b_out    # (S*B, 128)
    m = jnp.max(logits, axis=-1, keepdims=True)
    e = jnp.exp(logits - m)                                         # padded lanes -> exactly 0
    denom = jnp.sum(e, axis=-1, keepdims=True)
    out_ref[...] = e * pl.reciprocal(denom, approx=False)           # exact normalization


_VMEM = pl.BlockSpec(memory_space=pltpu.MemorySpace.VMEM)

_fused_call = pl.pallas_call(
    _fused_forward_kernel,
    out_shape=(jax.ShapeDtypeStruct((SEQ * BATCH, VPAD), jnp.float32),
               jax.ShapeDtypeStruct((LAYERS, BATCH, HID), jnp.float32),
               jax.ShapeDtypeStruct((LAYERS, BATCH, HID), jnp.float32)),
    in_specs=[_VMEM] * 7,
    out_specs=(_VMEM, _VMEM, _VMEM),
    scratch_shapes=[
        pltpu.VMEM((SEQ * BATCH, HID), jnp.float32),   # last-layer outputs, time-major
    ],
)


@jax.jit
def forward(ids, p):
    B, S = ids.shape
    # Time-major row order (r = t*B + b) for the recurrence.
    ids_tm = jnp.transpose(ids).reshape(S * B, 1).astype(jnp.int32)

    # Fold embedding into layer-0's input projection (+ combined layer-0 bias).
    xp0_tab = p["emb"] @ p["w_ih_t"][0] + p["bias"][0]              # (V, 4H)
    # Layer-1 input + recurrent weights fused for the wavefront matmul.
    wcat1 = jnp.concatenate([p["w_ih_t"][1], p["w_hh_t"][1]], axis=0)   # (2H, 4H)
    # Fold BatchNorm running stats into scale/shift.
    bn_s = p["bn_gamma"] * lax.rsqrt(p["bn_var"] + BN_EPS)          # (1, H)
    bn_t = p["bn_beta"] - p["bn_mean"] * bn_s                       # (1, H)
    # Pack the tiny per-channel operands into one (4,128) array (fewer DMAs).
    aux = jnp.zeros((4, VPAD), jnp.float32)
    aux = aux.at[0].set(p["bias"][1][0])                            # layer-1 combined bias
    aux = aux.at[1].set(p["b_out_pad"][0])                          # padded head bias
    aux = aux.at[2, :HID].set(bn_s[0])
    aux = aux.at[3, :HID].set(bn_t[0])
    hc0 = jnp.concatenate([p["h0"][:, 0, :], p["c0"][:, 0, :]], axis=0)  # (2L, H)

    out_flat, h_out, c_out = _fused_call(
        ids_tm, xp0_tab, p["w_hh_t"][0], wcat1, hc0, aux, p["w_out_t_pad"])
    # Lane-dense (S*B,128) kernel output -> tiny wrapper transpose + slice.
    probs = jnp.transpose(out_flat.reshape(S, B, VPAD), (1, 0, 2))[:, :, :VOCAB]
    return probs, (h_out, c_out)


# --------------------------------------------------------------------------
# Parameter construction (deterministic, mirrors module __init__ shapes).
# --------------------------------------------------------------------------
def init_params(key):
    ks = jax.random.split(key, 4 * LAYERS + 4)
    p = {}
    emb = jax.random.normal(ks[0], (VOCAB, EMB), jnp.float32)       # N(0,1) default
    p["emb"] = emb.at[PAD_IDX].set(0.0)                             # padding_idx row

    w_ih_t, w_hh_t, bias = [], [], []
    for l in range(LAYERS):
        d_in = EMB if l == 0 else HID
        kx = ks[1 + 4 * l: 5 + 4 * l]
        # xavier_normal-ish LSTM weights, normal biases (weight_init)
        w_ih = jax.random.normal(kx[0], (4 * HID, d_in), jnp.float32) * (2.0 / (4 * HID + d_in)) ** 0.5
        w_hh = jax.random.normal(kx[1], (4 * HID, HID), jnp.float32) * (2.0 / (5 * HID)) ** 0.5
        b_ih = jax.random.normal(kx[2], (4 * HID,), jnp.float32)
        b_hh = jax.random.normal(kx[3], (4 * HID,), jnp.float32)
        w_ih_t.append(jnp.transpose(w_ih))                          # (D_in, 4H)
        w_hh_t.append(jnp.transpose(w_hh))                          # (H, 4H)
        bias.append((b_ih + b_hh).reshape(1, 4 * HID))
    p["w_ih_t"] = jnp.stack(w_ih_t)                                 # (L, D_in, 4H)
    p["w_hh_t"] = jnp.stack(w_hh_t)                                 # (L, H, 4H)
    p["bias"] = jnp.stack(bias)                                     # (L, 1, 4H)

    # h0, c0 parameters: zeros(L, 1, H)
    p["h0"] = jnp.zeros((LAYERS, 1, HID), jnp.float32)
    p["c0"] = jnp.zeros((LAYERS, 1, HID), jnp.float32)

    # BatchNorm1d defaults (untouched by weight_init)
    p["bn_gamma"] = jnp.ones((1, HID), jnp.float32)
    p["bn_beta"] = jnp.zeros((1, HID), jnp.float32)
    p["bn_mean"] = jnp.zeros((1, HID), jnp.float32)
    p["bn_var"] = jnp.ones((1, HID), jnp.float32)

    # output Linear: kaiming_normal-ish weight, small bias
    w_out = jax.random.normal(ks[-2], (VOCAB, HID), jnp.float32) * (2.0 / HID) ** 0.5
    b_out = jax.random.normal(ks[-1], (VOCAB,), jnp.float32) * 0.1
    p["w_out_t"] = jnp.transpose(w_out)                             # (H, V)  (reference)
    p["b_out"] = b_out
    # Lane-dense padded head: zero-padded weights, -1e30 padded bias so the
    # softmax over the 16 real classes is unchanged (padded probs are exactly 0).
    p["w_out_t_pad"] = jnp.zeros((HID, VPAD), jnp.float32).at[:, :VOCAB].set(p["w_out_t"])
    p["b_out_pad"] = jnp.full((1, VPAD), NEG_BIG, jnp.float32).at[0, :VOCAB].set(b_out)
    return p


# --------------------------------------------------------------------------
# Pure-JAX reference for a correctness check.
# --------------------------------------------------------------------------
def reference_forward(ids, p):
    B, S = ids.shape
    out = p["emb"][ids]                                             # (B, S, E)
    hs, cs = [], []
    for l in range(LAYERS):
        w_ih_t, w_hh_t, b = p["w_ih_t"][l], p["w_hh_t"][l], p["bias"][l]
        hl = jnp.broadcast_to(p["h0"][l], (B, HID))
        cl = jnp.broadcast_to(p["c0"][l], (B, HID))
        ys = []
        for t in range(S):
            gates = out[:, t] @ w_ih_t + hl @ w_hh_t + b
            i = jax.nn.sigmoid(gates[:, :HID])
            f = jax.nn.sigmoid(gates[:, HID:2 * HID])
            g = jnp.tanh(gates[:, 2 * HID:3 * HID])
            o = jax.nn.sigmoid(gates[:, 3 * HID:])
            cl = f * cl + i * g
            hl = o * jnp.tanh(cl)
            ys.append(hl)
        out = jnp.stack(ys, axis=1)                                 # (B, S, H)
        hs.append(hl)
        cs.append(cl)
    xhat = (out - p["bn_mean"][0]) / jnp.sqrt(p["bn_var"][0] + BN_EPS)
    y_bn = xhat * p["bn_gamma"][0] + p["bn_beta"][0]
    act = jnp.where(y_bn >= 0, y_bn, LEAKY_SLOPE * y_bn)
    logits = act @ p["w_out_t"] + p["b_out"]
    probs = jax.nn.softmax(logits, axis=-1)
    return probs, (jnp.stack(hs, axis=0), jnp.stack(cs, axis=0))


if __name__ == "__main__":
    key = jax.random.PRNGKey(0)
    k_param, k_ids = jax.random.split(key)
    params = init_params(k_param)
    ids = jax.random.randint(k_ids, (BATCH, SEQ), 1, VOCAB, dtype=jnp.int32)

    out, (h_out, c_out) = forward(ids, params)
    jax.block_until_ready(out)

    ref_out, (ref_h, ref_c) = reference_forward(ids, params)
    assert out.shape == (BATCH, SEQ, VOCAB)
    assert h_out.shape == (LAYERS, BATCH, HID)
    assert c_out.shape == (LAYERS, BATCH, HID)
    assert jnp.allclose(out, ref_out, atol=2e-3, rtol=2e-3)
    assert jnp.allclose(h_out, ref_h, atol=2e-4, rtol=2e-4)
    assert jnp.allclose(c_out, ref_c, atol=2e-4, rtol=2e-4)
    # Exact reciprocal in the softmax -> probabilities sum to 1 to f32 accuracy.
    assert jnp.allclose(jnp.sum(out, axis=-1), 1.0, atol=1e-3)

    print("KERNEL_OK")
</pallas_src>

<mosaic_0001>
module attributes {stable_mosaic.version = 11 : i64} {
  func.func @_fused_forward_kernel(%arg0: memref<16x1xi32, #tpu.memory_space<vmem>>, %arg1: memref<16x128xf32, #tpu.memory_space<vmem>>, %arg2: memref<32x128xf32, #tpu.memory_space<vmem>>, %arg3: memref<64x128xf32, #tpu.memory_space<vmem>>, %arg4: memref<4x32xf32, #tpu.memory_space<vmem>>, %arg5: memref<4x128xf32, #tpu.memory_space<vmem>>, %arg6: memref<32x128xf32, #tpu.memory_space<vmem>>, %arg7: memref<16x128xf32, #tpu.memory_space<vmem>>, %arg8: memref<2x2x32xf32, #tpu.memory_space<vmem>>, %arg9: memref<2x2x32xf32, #tpu.memory_space<vmem>>, %arg10: memref<16x32xf32, #tpu.memory_space<vmem>>) attributes {dimension_semantics = [], scalar_prefetch = 0 : i64, scratch_operands = 1 : i64, tpu.core_type = #tpu.core_type<tc>} {
    %c0 = arith.constant 0 : index
    %c0_0 = arith.constant 0 : index
    %0 = vector.load %arg0[%c0, %c0_0] : memref<16x1xi32, #tpu.memory_space<vmem>>, vector<16x1xi32>
    %1 = tpu.iota {dimensions = array<i32: 1>} : vector<16x16xi32>
    %2 = vector.broadcast %0 : vector<16x1xi32> to vector<16x16xi32>
    %3 = arith.cmpi eq, %2, %1 : vector<16x16xi32>
    %cst = arith.constant 1.000000e+00 : f32
    %cst_1 = arith.constant 0.000000e+00 : f32
    %4 = vector.broadcast %cst : f32 to vector<16x16xf32>
    %5 = vector.broadcast %cst_1 : f32 to vector<16x16xf32>
    %6 = arith.select %3, %4, %5 : vector<16x16xi1>, vector<16x16xf32>
    %c0_2 = arith.constant 0 : index
    %c0_3 = arith.constant 0 : index
    %7 = vector.load %arg1[%c0_2, %c0_3] : memref<16x128xf32, #tpu.memory_space<vmem>>, vector<16x128xf32>
    %cst_4 = arith.constant dense<0.000000e+00> : vector<16x128xf32>
    %8 = tpu.matmul %6, %7, %cst_4 {dimension_numbers = #tpu.dot_dimension_numbers<[1], [0], [0], [1], [0, 0, 1, 1], [], []>} : vector<16x16xf32>, vector<16x128xf32>, vector<16x128xf32> -> vector<16x128xf32>
    %c0_5 = arith.constant 0 : index
    %c0_6 = arith.constant 0 : index
    %9 = vector.load %arg2[%c0_5, %c0_6] : memref<32x128xf32, #tpu.memory_space<vmem>>, vector<32x128xf32>
    %c0_7 = arith.constant 0 : index
    %c0_8 = arith.constant 0 : index
    %10 = vector.load %arg3[%c0_7, %c0_8] : memref<64x128xf32, #tpu.memory_space<vmem>>, vector<64x128xf32>
    %c0_9 = arith.constant 0 : index
    %c0_10 = arith.constant 0 : index
    %11 = vector.load %arg5[%c0_9, %c0_10] : memref<4x128xf32, #tpu.memory_space<vmem>>, vector<4x128xf32>
    %12 = vector.extract_strided_slice %11 {offsets = [0, 0], sizes = [1, 128], strides = [1, 1]} : vector<4x128xf32> to vector<1x128xf32>
    %13 = vector.extract_strided_slice %11 {offsets = [1, 0], sizes = [1, 128], strides = [1, 1]} : vector<4x128xf32> to vector<1x128xf32>
    %14 = vector.extract_strided_slice %11 {offsets = [2, 0], sizes = [1, 32], strides = [1, 1]} : vector<4x128xf32> to vector<1x32xf32>
    %15 = vector.extract_strided_slice %11 {offsets = [3, 0], sizes = [1, 32], strides = [1, 1]} : vector<4x128xf32> to vector<1x32xf32>
    %16 = tpu.iota {dimensions = array<i32: 1>} : vector<2x128xi32>
    %c64_i32 = arith.constant 64 : i32
    %17 = vector.broadcast %c64_i32 : i32 to vector<2x128xi32>
    %18 = arith.cmpi sge, %16, %17 : vector<2x128xi32>
    %c96_i32 = arith.constant 96 : i32
    %19 = vector.broadcast %c96_i32 : i32 to vector<2x128xi32>
    %20 = arith.cmpi slt, %16, %19 : vector<2x128xi32>
    %21 = arith.andi %18, %20 : vector<2x128xi1>
    %c0_11 = arith.constant 0 : index
    %c0_12 = arith.constant 0 : index
    %22 = vector.load %arg4[%c0_11, %c0_12] : memref<4x32xf32, #tpu.memory_space<vmem>>, vector<1x32xf32>
    %23 = vector.shape_cast %22 : vector<1x32xf32> to vector<1x32xf32>
    %24 = vector.broadcast %23 : vector<1x32xf32> to vector<2x32xf32>
    %c1 = arith.constant 1 : index
    %c0_13 = arith.constant 0 : index
    %25 = vector.load %arg4[%c1, %c0_13] : memref<4x32xf32, #tpu.memory_space<vmem>>, vector<1x32xf32>
    %26 = vector.shape_cast %25 : vector<1x32xf32> to vector<1x32xf32>
    %27 = vector.broadcast %26 : vector<1x32xf32> to vector<2x32xf32>
    %c2 = arith.constant 2 : index
    %c0_14 = arith.constant 0 : index
    %28 = vector.load %arg4[%c2, %c0_14] : memref<4x32xf32, #tpu.memory_space<vmem>>, vector<1x32xf32>
    %29 = vector.shape_cast %28 : vector<1x32xf32> to vector<1x32xf32>
    %30 = vector.broadcast %29 : vector<1x32xf32> to vector<2x32xf32>
    %c3 = arith.constant 3 : index
    %c0_15 = arith.constant 0 : index
    %31 = vector.load %arg4[%c3, %c0_15] : memref<4x32xf32, #tpu.memory_space<vmem>>, vector<1x32xf32>
    %32 = vector.shape_cast %31 : vector<1x32xf32> to vector<1x32xf32>
    %33 = vector.broadcast %32 : vector<1x32xf32> to vector<2x32xf32>
    %34 = vector.extract_strided_slice %8 {offsets = [0, 0], sizes = [2, 128], strides = [1, 1]} : vector<16x128xf32> to vector<2x128xf32>
    %cst_16 = arith.constant dense<0.000000e+00> : vector<2x128xf32>
    %35 = tpu.matmul %24, %9, %cst_16 {dimension_numbers = #tpu.dot_dimension_numbers<[1], [0], [0], [1], [0, 0, 1, 1], [], []>} : vector<2x32xf32>, vector<32x128xf32>, vector<2x128xf32> -> vector<2x128xf32>
    %36 = arith.addf %34, %35 : vector<2x128xf32>
    %37 = arith.negf %36 : vector<2x128xf32>
    %38 = math.exp %37 : vector<2x128xf32>
    %cst_17 = arith.constant 1.000000e+00 : f32
    %39 = vector.broadcast %cst_17 : f32 to vector<2x128xf32>
    %40 = arith.addf %39, %38 : vector<2x128xf32>
    %41 = arith.divf %39, %40 : vector<2x128xf32>
    %42 = math.tanh %36 : vector<2x128xf32>
    %43 = arith.select %21, %42, %41 : vector<2x128xi1>, vector<2x128xf32>
    %44 = vector.extract_strided_slice %43 {offsets = [0, 32], sizes = [2, 32], strides = [1, 1]} : vector<2x128xf32> to vector<2x32xf32>
    %45 = arith.mulf %44, %30 : vector<2x32xf32>
    %46 = vector.extract_strided_slice %43 {offsets = [0, 0], sizes = [2, 32], strides = [1, 1]} : vector<2x128xf32> to vector<2x32xf32>
    %47 = vector.extract_strided_slice %43 {offsets = [0, 64], sizes = [2, 32], strides = [1, 1]} : vector<2x128xf32> to vector<2x32xf32>
    %48 = arith.mulf %46, %47 : vector<2x32xf32>
    %49 = arith.addf %45, %48 : vector<2x32xf32>
    %50 = vector.extract_strided_slice %43 {offsets = [0, 96], sizes = [2, 32], strides = [1, 1]} : vector<2x128xf32> to vector<2x32xf32>
    %51 = math.tanh %49 : vector<2x32xf32>
    %52 = arith.mulf %50, %51 : vector<2x32xf32>
    %53 = tpu.concatenate %52, %27 in 1 : vector<2x32xf32>, vector<2x32xf32> -> vector<2x64xf32>
    %cst_18 = arith.constant dense<0.000000e+00> : vector<2x128xf32>
    %54 = tpu.matmul %53, %10, %cst_18 {dimension_numbers = #tpu.dot_dimension_numbers<[1], [0], [0], [1], [0, 0, 1, 1], [], []>} : vector<2x64xf32>, vector<64x128xf32>, vector<2x128xf32> -> vector<2x128xf32>
    %55 = vector.broadcast %12 : vector<1x128xf32> to vector<2x128xf32>
    %56 = arith.addf %54, %55 : vector<2x128xf32>
    %57 = arith.negf %56 : vector<2x128xf32>
    %58 = math.exp %57 : vector<2x128xf32>
    %cst_19 = arith.constant 1.000000e+00 : f32
    %59 = vector.broadcast %cst_19 : f32 to vector<2x128xf32>
    %60 = arith.addf %59, %58 : vector<2x128xf32>
    %61 = arith.divf %59, %60 : vector<2x128xf32>
    %62 = math.tanh %56 : vector<2x128xf32>
    %63 = arith.select %21, %62, %61 : vector<2x128xi1>, vector<2x128xf32>
    %64 = vector.extract_strided_slice %63 {offsets = [0, 32], sizes = [2, 32], strides = [1, 1]} : vector<2x128xf32> to vector<2x32xf32>
    %65 = arith.mulf %64, %33 : vector<2x32xf32>
    %66 = vector.extract_strided_slice %63 {offsets = [0, 0], sizes = [2, 32], strides = [1, 1]} : vector<2x128xf32> to vector<2x32xf32>
    %67 = vector.extract_strided_slice %63 {offsets = [0, 64], sizes = [2, 32], strides = [1, 1]} : vector<2x128xf32> to vector<2x32xf32>
    %68 = arith.mulf %66, %67 : vector<2x32xf32>
    %69 = arith.addf %65, %68 : vector<2x32xf32>
    %70 = vector.extract_strided_slice %63 {offsets = [0, 96], sizes = [2, 32], strides = [1, 1]} : vector<2x128xf32> to vector<2x32xf32>
    %71 = math.tanh %69 : vector<2x32xf32>
    %72 = arith.mulf %70, %71 : vector<2x32xf32>
    %c0_20 = arith.constant 0 : index
    %c0_21 = arith.constant 0 : index
    %73 = vector.load %arg10[%c0_20, %c0_21] : memref<16x32xf32, #tpu.memory_space<vmem>>, vector<2x32xf32>
    tpu.vector_store %arg10[%c0_20, %c0_21], %72 {strides = array<i32>} : memref<16x32xf32, #tpu.memory_space<vmem>>, vector<2x32xf32>,
    %74 = vector.extract_strided_slice %8 {offsets = [2, 0], sizes = [2, 128], strides = [1, 1]} : vector<16x128xf32> to vector<2x128xf32>
    %cst_22 = arith.constant dense<0.000000e+00> : vector<2x128xf32>
    %75 = tpu.matmul %52, %9, %cst_22 {dimension_numbers = #tpu.dot_dimension_numbers<[1], [0], [0], [1], [0, 0, 1, 1], [], []>} : vector<2x32xf32>, vector<32x128xf32>, vector<2x128xf32> -> vector<2x128xf32>
    %76 = arith.addf %74, %75 : vector<2x128xf32>
    %77 = arith.negf %76 : vector<2x128xf32>
    %78 = math.exp %77 : vector<2x128xf32>
    %cst_23 = arith.constant 1.000000e+00 : f32
    %79 = vector.broadcast %cst_23 : f32 to vector<2x128xf32>
    %80 = arith.addf %79, %78 : vector<2x128xf32>
    %81 = arith.divf %79, %80 : vector<2x128xf32>
    %82 = math.tanh %76 : vector<2x128xf32>
    %83 = arith.select %21, %82, %81 : vector<2x128xi1>, vector<2x128xf32>
    %84 = vector.extract_strided_slice %83 {offsets = [0, 32], sizes = [2, 32], strides = [1, 1]} : vector<2x128xf32> to vector<2x32xf32>
    %85 = arith.mulf %84, %49 : vector<2x32xf32>
    %86 = vector.extract_strided_slice %83 {offsets = [0, 0], sizes = [2, 32], strides = [1, 1]} : vector<2x128xf32> to vector<2x32xf32>
    %87 = vector.extract_strided_slice %83 {offsets = [0, 64], sizes = [2, 32], strides = [1, 1]} : vector<2x128xf32> to vector<2x32xf32>
    %88 = arith.mulf %86, %87 : vector<2x32xf32>
    %89 = arith.addf %85, %88 : vector<2x32xf32>
    %90 = vector.extract_strided_slice %83 {offsets = [0, 96], sizes = [2, 32], strides = [1, 1]} : vector<2x128xf32> to vector<2x32xf32>
    %91 = math.tanh %89 : vector<2x32xf32>
    %92 = arith.mulf %90, %91 : vector<2x32xf32>
    %93 = tpu.concatenate %92, %72 in 1 : vector<2x32xf32>, vector<2x32xf32> -> vector<2x64xf32>
    %cst_24 = arith.constant dense<0.000000e+00> : vector<2x128xf32>
    %94 = tpu.matmul %93, %10, %cst_24 {dimension_numbers = #tpu.dot_dimension_numbers<[1], [0], [0], [1], [0, 0, 1, 1], [], []>} : vector<2x64xf32>, vector<64x128xf32>, vector<2x128xf32> -> vector<2x128xf32>
    %95 = vector.broadcast %12 : vector<1x128xf32> to vector<2x128xf32>
    %96 = arith.addf %94, %95 : vector<2x128xf32>
    %97 = arith.negf %96 : vector<2x128xf32>
    %98 = math.exp %97 : vector<2x128xf32>
    %cst_25 = arith.constant 1.000000e+00 : f32
    %99 = vector.broadcast %cst_25 : f32 to vector<2x128xf32>
    %100 = arith.addf %99, %98 : vector<2x128xf32>
    %101 = arith.divf %99, %100 : vector<2x128xf32>
    %102 = math.tanh %96 : vector<2x128xf32>
    %103 = arith.select %21, %102, %101 : vector<2x128xi1>, vector<2x128xf32>
    %104 = vector.extract_strided_slice %103 {offsets = [0, 32], sizes = [2, 32], strides = [1, 1]} : vector<2x128xf32> to vector<2x32xf32>
    %105 = arith.mulf %104, %69 : vector<2x32xf32>
    %106 = vector.extract_strided_slice %103 {offsets = [0, 0], sizes = [2, 32], strides = [1, 1]} : vector<2x128xf32> to vector<2x32xf32>
    %107 = vector.extract_strided_slice %103 {offsets = [0, 64], sizes = [2, 32], strides = [1, 1]} : vector<2x128xf32> to vector<2x32xf32>
    %108 = arith.mulf %106, %107 : vector<2x32xf32>
    %109 = arith.addf %105, %108 : vector<2x32xf32>
    %110 = vector.extract_strided_slice %103 {offsets = [0, 96], sizes = [2, 32], strides = [1, 1]} : vector<2x128xf32> to vector<2x32xf32>
    %111 = math.tanh %109 : vector<2x32xf32>
    %112 = arith.mulf %110, %111 : vector<2x32xf32>
    %c2_26 = arith.constant 2 : index
    %c0_27 = arith.constant 0 : index
    %113 = vector.load %arg10[%c2_26, %c0_27] : memref<16x32xf32, #tpu.memory_space<vmem>>, vector<2x32xf32>
    tpu.vector_store %arg10[%c2_26, %c0_27], %112 {strides = array<i32>} : memref<16x32xf32, #tpu.memory_space<vmem>>, vector<2x32xf32>,
    %114 = vector.extract_strided_slice %8 {offsets = [4, 0], sizes = [2, 128], strides = [1, 1]} : vector<16x128xf32> to vector<2x128xf32>
    %cst_28 = arith.constant dense<0.000000e+00> : vector<2x128xf32>
    %115 = tpu.matmul %92, %9, %cst_28 {dimension_numbers = #tpu.dot_dimension_numbers<[1], [0], [0], [1], [0, 0, 1, 1], [], []>} : vector<2x32xf32>, vector<32x128xf32>, vector<2x128xf32> -> vector<2x128xf32>
    %116 = arith.addf %114, %115 : vector<2x128xf32>
    %117 = arith.negf %116 : vector<2x128xf32>
    %118 = math.exp %117 : vector<2x128xf32>
    %cst_29 = arith.constant 1.000000e+00 : f32
    %119 = vector.broadcast %cst_29 : f32 to vector<2x128xf32>
    %120 = arith.addf %119, %118 : vector<2x128xf32>
    %121 = arith.divf %119, %120 : vector<2x128xf32>
    %122 = math.tanh %116 : vector<2x128xf32>
    %123 = arith.select %21, %122, %121 : vector<2x128xi1>, vector<2x128xf32>
    %124 = vector.extract_strided_slice %123 {offsets = [0, 32], sizes = [2, 32], strides = [1, 1]} : vector<2x128xf32> to vector<2x32xf32>
    %125 = arith.mulf %124, %89 : vector<2x32xf32>
    %126 = vector.extract_strided_slice %123 {offsets = [0, 0], sizes = [2, 32], strides = [1, 1]} : vector<2x128xf32> to vector<2x32xf32>
    %127 = vector.extract_strided_slice %123 {offsets = [0, 64], sizes = [2, 32], strides = [1, 1]} : vector<2x128xf32> to vector<2x32xf32>
    %128 = arith.mulf %126, %127 : vector<2x32xf32>
    %129 = arith.addf %125, %128 : vector<2x32xf32>
    %130 = vector.extract_strided_slice %123 {offsets = [0, 96], sizes = [2, 32], strides = [1, 1]} : vector<2x128xf32> to vector<2x32xf32>
    %131 = math.tanh %129 : vector<2x32xf32>
    %132 = arith.mulf %130, %131 : vector<2x32xf32>
    %133 = tpu.concatenate %132, %112 in 1 : vector<2x32xf32>, vector<2x32xf32> -> vector<2x64xf32>
    %cst_30 = arith.constant dense<0.000000e+00> : vector<2x128xf32>
    %134 = tpu.matmul %133, %10, %cst_30 {dimension_numbers = #tpu.dot_dimension_numbers<[1], [0], [0], [1], [0, 0, 1, 1], [], []>} : vector<2x64xf32>, vector<64x128xf32>, vector<2x128xf32> -> vector<2x128xf32>
    %135 = vector.broadcast %12 : vector<1x128xf32> to vector<2x128xf32>
    %136 = arith.addf %134, %135 : vector<2x128xf32>
    %137 = arith.negf %136 : vector<2x128xf32>
    %138 = math.exp %137 : vector<2x128xf32>
    %cst_31 = arith.constant 1.000000e+00 : f32
    %139 = vector.broadcast %cst_31 : f32 to vector<2x128xf32>
    %140 = arith.addf %139, %138 : vector<2x128xf32>
    %141 = arith.divf %139, %140 : vector<2x128xf32>
    %142 = math.tanh %136 : vector<2x128xf32>
    %143 = arith.select %21, %142, %141 : vector<2x128xi1>, vector<2x128xf32>
    %144 = vector.extract_strided_slice %143 {offsets = [0, 32], sizes = [2, 32], strides = [1, 1]} : vector<2x128xf32> to vector<2x32xf32>
    %145 = arith.mulf %144, %109 : vector<2x32xf32>
    %146 = vector.extract_strided_slice %143 {offsets = [0, 0], sizes = [2, 32], strides = [1, 1]} : vector<2x128xf32> to vector<2x32xf32>
    %147 = vector.extract_strided_slice %143 {offsets = [0, 64], sizes = [2, 32], strides = [1, 1]} : vector<2x128xf32> to vector<2x32xf32>
    %148 = arith.mulf %146, %147 : vector<2x32xf32>
    %149 = arith.addf %145, %148 : vector<2x32xf32>
    %150 = vector.extract_strided_slice %143 {offsets = [0, 96], sizes = [2, 32], strides = [1, 1]} : vector<2x128xf32> to vector<2x32xf32>
    %151 = math.tanh %149 : vector<2x32xf32>
    %152 = arith.mulf %150, %151 : vector<2x32xf32>
    %c4 = arith.constant 4 : index
    %c0_32 = arith.constant 0 : index
    %153 = vector.load %arg10[%c4, %c0_32] : memref<16x32xf32, #tpu.memory_space<vmem>>, vector<2x32xf32>
    tpu.vector_store %arg10[%c4, %c0_32], %152 {strides = array<i32>} : memref<16x32xf32, #tpu.memory_space<vmem>>, vector<2x32xf32>,
    %154 = vector.extract_strided_slice %8 {offsets = [6, 0], sizes = [2, 128], strides = [1, 1]} : vector<16x128xf32> to vector<2x128xf32>
    %cst_33 = arith.constant dense<0.000000e+00> : vector<2x128xf32>
    %155 = tpu.matmul %132, %9, %cst_33 {dimension_numbers = #tpu.dot_dimension_numbers<[1], [0], [0], [1], [0, 0, 1, 1], [], []>} : vector<2x32xf32>, vector<32x128xf32>, vector<2x128xf32> -> vector<2x128xf32>
    %156 = arith.addf %154, %155 : vector<2x128xf32>
    %157 = arith.negf %156 : vector<2x128xf32>
    %158 = math.exp %157 : vector<2x128xf32>
    %cst_34 = arith.constant 1.000000e+00 : f32
    %159 = vector.broadcast %cst_34 : f32 to vector<2x128xf32>
    %160 = arith.addf %159, %158 : vector<2x128xf32>
    %161 = arith.divf %159, %160 : vector<2x128xf32>
    %162 = math.tanh %156 : vector<2x128xf32>
    %163 = arith.select %21, %162, %161 : vector<2x128xi1>, vector<2x128xf32>
    %164 = vector.extract_strided_slice %163 {offsets = [0, 32], sizes = [2, 32], strides = [1, 1]} : vector<2x128xf32> to vector<2x32xf32>
    %165 = arith.mulf %164, %129 : vector<2x32xf32>
    %166 = vector.extract_strided_slice %163 {offsets = [0, 0], sizes = [2, 32], strides = [1, 1]} : vector<2x128xf32> to vector<2x32xf32>
    %167 = vector.extract_strided_slice %163 {offsets = [0, 64], sizes = [2, 32], strides = [1, 1]} : vector<2x128xf32> to vector<2x32xf32>
    %168 = arith.mulf %166, %167 : vector<2x32xf32>
    %169 = arith.addf %165, %168 : vector<2x32xf32>
    %170 = vector.extract_strided_slice %163 {offsets = [0, 96], sizes = [2, 32], strides = [1, 1]} : vector<2x128xf32> to vector<2x32xf32>
    %171 = math.tanh %169 : vector<2x32xf32>
    %172 = arith.mulf %170, %171 : vector<2x32xf32>
    %173 = tpu.concatenate %172, %152 in 1 : vector<2x32xf32>, vector<2x32xf32> -> vector<2x64xf32>
    %cst_35 = arith.constant dense<0.000000e+00> : vector<2x128xf32>
    %174 = tpu.matmul %173, %10, %cst_35 {dimension_numbers = #tpu.dot_dimension_numbers<[1], [0], [0], [1], [0, 0, 1, 1], [], []>} : vector<2x64xf32>, vector<64x128xf32>, vector<2x128xf32> -> vector<2x128xf32>
    %175 = vector.broadcast %12 : vector<1x128xf32> to vector<2x128xf32>
    %176 = arith.addf %174, %175 : vector<2x128xf32>
    %177 = arith.negf %176 : vector<2x128xf32>
    %178 = math.exp %177 : vector<2x128xf32>
    %cst_36 = arith.constant 1.000000e+00 : f32
    %179 = vector.broadcast %cst_36 : f32 to vector<2x128xf32>
    %180 = arith.addf %179, %178 : vector<2x128xf32>
    %181 = arith.divf %179, %180 : vector<2x128xf32>
    %182 = math.tanh %176 : vector<2x128xf32>
    %183 = arith.select %21, %182, %181 : vector<2x128xi1>, vector<2x128xf32>
    %184 = vector.extract_strided_slice %183 {offsets = [0, 32], sizes = [2, 32], strides = [1, 1]} : vector<2x128xf32> to vector<2x32xf32>
    %185 = arith.mulf %184, %149 : vector<2x32xf32>
    %186 = vector.extract_strided_slice %183 {offsets = [0, 0], sizes = [2, 32], strides = [1, 1]} : vector<2x128xf32> to vector<2x32xf32>
    %187 = vector.extract_strided_slice %183 {offsets = [0, 64], sizes = [2, 32], strides = [1, 1]} : vector<2x128xf32> to vector<2x32xf32>
    %188 = arith.mulf %186, %187 : vector<2x32xf32>
    %189 = arith.addf %185, %188 : vector<2x32xf32>
    %190 = vector.extract_strided_slice %183 {offsets = [0, 96], sizes = [2, 32], strides = [1, 1]} : vector<2x128xf32> to vector<2x32xf32>
    %191 = math.tanh %189 : vector<2x32xf32>
    %192 = arith.mulf %190, %191 : vector<2x32xf32>
    %c6 = arith.constant 6 : index
    %c0_37 = arith.constant 0 : index
    %193 = vector.load %arg10[%c6, %c0_37] : memref<16x32xf32, #tpu.memory_space<vmem>>, vector<2x32xf32>
    tpu.vector_store %arg10[%c6, %c0_37], %192 {strides = array<i32>} : memref<16x32xf32, #tpu.memory_space<vmem>>, vector<2x32xf32>,
    %194 = vector.extract_strided_slice %8 {offsets = [8, 0], sizes = [2, 128], strides = [1, 1]} : vector<16x128xf32> to vector<2x128xf32>
    %cst_38 = arith.constant dense<0.000000e+00> : vector<2x128xf32>
    %195 = tpu.matmul %172, %9, %cst_38 {dimension_numbers = #tpu.dot_dimension_numbers<[1], [0], [0], [1], [0, 0, 1, 1], [], []>} : vector<2x32xf32>, vector<32x128xf32>, vector<2x128xf32> -> vector<2x128xf32>
    %196 = arith.addf %194, %195 : vector<2x128xf32>
    %197 = arith.negf %196 : vector<2x128xf32>
    %198 = math.exp %197 : vector<2x128xf32>
    %cst_39 = arith.constant 1.000000e+00 : f32
    %199 = vector.broadcast %cst_39 : f32 to vector<2x128xf32>
    %200 = arith.addf %199, %198 : vector<2x128xf32>
    %201 = arith.divf %199, %200 : vector<2x128xf32>
    %202 = math.tanh %196 : vector<2x128xf32>
    %203 = arith.select %21, %202, %201 : vector<2x128xi1>, vector<2x128xf32>
    %204 = vector.extract_strided_slice %203 {offsets = [0, 32], sizes = [2, 32], strides = [1, 1]} : vector<2x128xf32> to vector<2x32xf32>
    %205 = arith.mulf %204, %169 : vector<2x32xf32>
    %206 = vector.extract_strided_slice %203 {offsets = [0, 0], sizes = [2, 32], strides = [1, 1]} : vector<2x128xf32> to vector<2x32xf32>
    %207 = vector.extract_strided_slice %203 {offsets = [0, 64], sizes = [2, 32], strides = [1, 1]} : vector<2x128xf32> to vector<2x32xf32>
    %208 = arith.mulf %206, %207 : vector<2x32xf32>
    %209 = arith.addf %205, %208 : vector<2x32xf32>
    %210 = vector.extract_strided_slice %203 {offsets = [0, 96], sizes = [2, 32], strides = [1, 1]} : vector<2x128xf32> to vector<2x32xf32>
    %211 = math.tanh %209 : vector<2x32xf32>
    %212 = arith.mulf %210, %211 : vector<2x32xf32>
    %213 = tpu.concatenate %212, %192 in 1 : vector<2x32xf32>, vector<2x32xf32> -> vector<2x64xf32>
    %cst_40 = arith.constant dense<0.000000e+00> : vector<2x128xf32>
    %214 = tpu.matmul %213, %10, %cst_40 {dimension_numbers = #tpu.dot_dimension_numbers<[1], [0], [0], [1], [0, 0, 1, 1], [], []>} : vector<2x64xf32>, vector<64x128xf32>, vector<2x128xf32> -> vector<2x128xf32>
    %215 = vector.broadcast %12 : vector<1x128xf32> to vector<2x128xf32>
    %216 = arith.addf %214, %215 : vector<2x128xf32>
    %217 = arith.negf %216 : vector<2x128xf32>
    %218 = math.exp %217 : vector<2x128xf32>
    %cst_41 = arith.constant 1.000000e+00 : f32
    %219 = vector.broadcast %cst_41 : f32 to vector<2x128xf32>
    %220 = arith.addf %219, %218 : vector<2x128xf32>
    %221 = arith.divf %219, %220 : vector<2x128xf32>
    %222 = math.tanh %216 : vector<2x128xf32>
    %223 = arith.select %21, %222, %221 : vector<2x128xi1>, vector<2x128xf32>
    %224 = vector.extract_strided_slice %223 {offsets = [0, 32], sizes = [2, 32], strides = [1, 1]} : vector<2x128xf32> to vector<2x32xf32>
    %225 = arith.mulf %224, %189 : vector<2x32xf32>
    %226 = vector.extract_strided_slice %223 {offsets = [0, 0], sizes = [2, 32], strides = [1, 1]} : vector<2x128xf32> to vector<2x32xf32>
    %227 = vector.extract_strided_slice %223 {offsets = [0, 64], sizes = [2, 32], strides = [1, 1]} : vector<2x128xf32> to vector<2x32xf32>
    %228 = arith.mulf %226, %227 : vector<2x32xf32>
    %229 = arith.addf %225, %228 : vector<2x32xf32>
    %230 = vector.extract_strided_slice %223 {offsets = [0, 96], sizes = [2, 32], strides = [1, 1]} : vector<2x128xf32> to vector<2x32xf32>
    %231 = math.tanh %229 : vector<2x32xf32>
    %232 = arith.mulf %230, %231 : vector<2x32xf32>
    %c8 = arith.constant 8 : index
    %c0_42 = arith.constant 0 : index
    %233 = vector.load %arg10[%c8, %c0_42] : memref<16x32xf32, #tpu.memory_space<vmem>>, vector<2x32xf32>
    tpu.vector_store %arg10[%c8, %c0_42], %232 {strides = array<i32>} : memref<16x32xf32, #tpu.memory_space<vmem>>, vector<2x32xf32>,
    %234 = vector.extract_strided_slice %8 {offsets = [10, 0], sizes = [2, 128], strides = [1, 1]} : vector<16x128xf32> to vector<2x128xf32>
    %cst_43 = arith.constant dense<0.000000e+00> : vector<2x128xf32>
    %235 = tpu.matmul %212, %9, %cst_43 {dimension_numbers = #tpu.dot_dimension_numbers<[1], [0], [0], [1], [0, 0, 1, 1], [], []>} : vector<2x32xf32>, vector<32x128xf32>, vector<2x128xf32> -> vector<2x128xf32>
    %236 = arith.addf %234, %235 : vector<2x128xf32>
    %237 = arith.negf %236 : vector<2x128xf32>
    %238 = math.exp %237 : vector<2x128xf32>
    %cst_44 = arith.constant 1.000000e+00 : f32
    %239 = vector.broadcast %cst_44 : f32 to vector<2x128xf32>
    %240 = arith.addf %239, %238 : vector<2x128xf32>
    %241 = arith.divf %239, %240 : vector<2x128xf32>
    %242 = math.tanh %236 : vector<2x128xf32>
    %243 = arith.select %21, %242, %241 : vector<2x128xi1>, vector<2x128xf32>
    %244 = vector.extract_strided_slice %243 {offsets = [0, 32], sizes = [2, 32], strides = [1, 1]} : vector<2x128xf32> to vector<2x32xf32>
    %245 = arith.mulf %244, %209 : vector<2x32xf32>
    %246 = vector.extract_strided_slice %243 {offsets = [0, 0], sizes = [2, 32], strides = [1, 1]} : vector<2x128xf32> to vector<2x32xf32>
    %247 = vector.extract_strided_slice %243 {offsets = [0, 64], sizes = [2, 32], strides = [1, 1]} : vector<2x128xf32> to vector<2x32xf32>
    %248 = arith.mulf %246, %247 : vector<2x32xf32>
    %249 = arith.addf %245, %248 : vector<2x32xf32>
    %250 = vector.extract_strided_slice %243 {offsets = [0, 96], sizes = [2, 32], strides = [1, 1]} : vector<2x128xf32> to vector<2x32xf32>
    %251 = math.tanh %249 : vector<2x32xf32>
    %252 = arith.mulf %250, %251 : vector<2x32xf32>
    %253 = tpu.concatenate %252, %232 in 1 : vector<2x32xf32>, vector<2x32xf32> -> vector<2x64xf32>
    %cst_45 = arith.constant dense<0.000000e+00> : vector<2x128xf32>
    %254 = tpu.matmul %253, %10, %cst_45 {dimension_numbers = #tpu.dot_dimension_numbers<[1], [0], [0], [1], [0, 0, 1, 1], [], []>} : vector<2x64xf32>, vector<64x128xf32>, vector<2x128xf32> -> vector<2x128xf32>
    %255 = vector.broadcast %12 : vector<1x128xf32> to vector<2x128xf32>
    %256 = arith.addf %254, %255 : vector<2x128xf32>
    %257 = arith.negf %256 : vector<2x128xf32>
    %258 = math.exp %257 : vector<2x128xf32>
    %cst_46 = arith.constant 1.000000e+00 : f32
    %259 = vector.broadcast %cst_46 : f32 to vector<2x128xf32>
    %260 = arith.addf %259, %258 : vector<2x128xf32>
    %261 = arith.divf %259, %260 : vector<2x128xf32>
    %262 = math.tanh %256 : vector<2x128xf32>
    %263 = arith.select %21, %262, %261 : vector<2x128xi1>, vector<2x128xf32>
    %264 = vector.extract_strided_slice %263 {offsets = [0, 32], sizes = [2, 32], strides = [1, 1]} : vector<2x128xf32> to vector<2x32xf32>
    %265 = arith.mulf %264, %229 : vector<2x32xf32>
    %266 = vector.extract_strided_slice %263 {offsets = [0, 0], sizes = [2, 32], strides = [1, 1]} : vector<2x128xf32> to vector<2x32xf32>
    %267 = vector.extract_strided_slice %263 {offsets = [0, 64], sizes = [2, 32], strides = [1, 1]} : vector<2x128xf32> to vector<2x32xf32>
    %268 = arith.mulf %266, %267 : vector<2x32xf32>
    %269 = arith.addf %265, %268 : vector<2x32xf32>
    %270 = vector.extract_strided_slice %263 {offsets = [0, 96], sizes = [2, 32], strides = [1, 1]} : vector<2x128xf32> to vector<2x32xf32>
    %271 = math.tanh %269 : vector<2x32xf32>
    %272 = arith.mulf %270, %271 : vector<2x32xf32>
    %c10 = arith.constant 10 : index
    %c0_47 = arith.constant 0 : index
    %273 = vector.load %arg10[%c10, %c0_47] : memref<16x32xf32, #tpu.memory_space<vmem>>, vector<2x32xf32>
    tpu.vector_store %arg10[%c10, %c0_47], %272 {strides = array<i32>} : memref<16x32xf32, #tpu.memory_space<vmem>>, vector<2x32xf32>,
    %274 = vector.extract_strided_slice %8 {offsets = [12, 0], sizes = [2, 128], strides = [1, 1]} : vector<16x128xf32> to vector<2x128xf32>
    %cst_48 = arith.constant dense<0.000000e+00> : vector<2x128xf32>
    %275 = tpu.matmul %252, %9, %cst_48 {dimension_numbers = #tpu.dot_dimension_numbers<[1], [0], [0], [1], [0, 0, 1, 1], [], []>} : vector<2x32xf32>, vector<32x128xf32>, vector<2x128xf32> -> vector<2x128xf32>
    %276 = arith.addf %274, %275 : vector<2x128xf32>
    %277 = arith.negf %276 : vector<2x128xf32>
    %278 = math.exp %277 : vector<2x128xf32>
    %cst_49 = arith.constant 1.000000e+00 : f32
    %279 = vector.broadcast %cst_49 : f32 to vector<2x128xf32>
    %280 = arith.addf %279, %278 : vector<2x128xf32>
    %281 = arith.divf %279, %280 : vector<2x128xf32>
    %282 = math.tanh %276 : vector<2x128xf32>
    %283 = arith.select %21, %282, %281 : vector<2x128xi1>, vector<2x128xf32>
    %284 = vector.extract_strided_slice %283 {offsets = [0, 32], sizes = [2, 32], strides = [1, 1]} : vector<2x128xf32> to vector<2x32xf32>
    %285 = arith.mulf %284, %249 : vector<2x32xf32>
    %286 = vector.extract_strided_slice %283 {offsets = [0, 0], sizes = [2, 32], strides = [1, 1]} : vector<2x128xf32> to vector<2x32xf32>
    %287 = vector.extract_strided_slice %283 {offsets = [0, 64], sizes = [2, 32], strides = [1, 1]} : vector<2x128xf32> to vector<2x32xf32>
    %288 = arith.mulf %286, %287 : vector<2x32xf32>
    %289 = arith.addf %285, %288 : vector<2x32xf32>
    %290 = vector.extract_strided_slice %283 {offsets = [0, 96], sizes = [2, 32], strides = [1, 1]} : vector<2x128xf32> to vector<2x32xf32>
    %291 = math.tanh %289 : vector<2x32xf32>
    %292 = arith.mulf %290, %291 : vector<2x32xf32>
    %293 = tpu.concatenate %292, %272 in 1 : vector<2x32xf32>, vector<2x32xf32> -> vector<2x64xf32>
    %cst_50 = arith.constant dense<0.000000e+00> : vector<2x128xf32>
    %294 = tpu.matmul %293, %10, %cst_50 {dimension_numbers = #tpu.dot_dimension_numbers<[1], [0], [0], [1], [0, 0, 1, 1], [], []>} : vector<2x64xf32>, vector<64x128xf32>, vector<2x128xf32> -> vector<2x128xf32>
    %295 = vector.broadcast %12 : vector<1x128xf32> to vector<2x128xf32>
    %296 = arith.addf %294, %295 : vector<2x128xf32>
    %297 = arith.negf %296 : vector<2x128xf32>
    %298 = math.exp %297 : vector<2x128xf32>
    %cst_51 = arith.constant 1.000000e+00 : f32
    %299 = vector.broadcast %cst_51 : f32 to vector<2x128xf32>
    %300 = arith.addf %299, %298 : vector<2x128xf32>
    %301 = arith.divf %299, %300 : vector<2x128xf32>
    %302 = math.tanh %296 : vector<2x128xf32>
    %303 = arith.select %21, %302, %301 : vector<2x128xi1>, vector<2x128xf32>
    %304 = vector.extract_strided_slice %303 {offsets = [0, 32], sizes = [2, 32], strides = [1, 1]} : vector<2x128xf32> to vector<2x32xf32>
    %305 = arith.mulf %304, %269 : vector<2x32xf32>
    %306 = vector.extract_strided_slice %303 {offsets = [0, 0], sizes = [2, 32], strides = [1, 1]} : vector<2x128xf32> to vector<2x32xf32>
    %307 = vector.extract_strided_slice %303 {offsets = [0, 64], sizes = [2, 32], strides = [1, 1]} : vector<2x128xf32> to vector<2x32xf32>
    %308 = arith.mulf %306, %307 : vector<2x32xf32>
    %309 = arith.addf %305, %308 : vector<2x32xf32>
    %310 = vector.extract_strided_slice %303 {offsets = [0, 96], sizes = [2, 32], strides = [1, 1]} : vector<2x128xf32> to vector<2x32xf32>
    %311 = math.tanh %309 : vector<2x32xf32>
    %312 = arith.mulf %310, %311 : vector<2x32xf32>
    %c12 = arith.constant 12 : index
    %c0_52 = arith.constant 0 : index
    %313 = vector.load %arg10[%c12, %c0_52] : memref<16x32xf32, #tpu.memory_space<vmem>>, vector<2x32xf32>
    tpu.vector_store %arg10[%c12, %c0_52], %312 {strides = array<i32>} : memref<16x32xf32, #tpu.memory_space<vmem>>, vector<2x32xf32>,
    %314 = vector.extract_strided_slice %8 {offsets = [14, 0], sizes = [2, 128], strides = [1, 1]} : vector<16x128xf32> to vector<2x128xf32>
    %cst_53 = arith.constant dense<0.000000e+00> : vector<2x128xf32>
    %315 = tpu.matmul %292, %9, %cst_53 {dimension_numbers = #tpu.dot_dimension_numbers<[1], [0], [0], [1], [0, 0, 1, 1], [], []>} : vector<2x32xf32>, vector<32x128xf32>, vector<2x128xf32> -> vector<2x128xf32>
    %316 = arith.addf %314, %315 : vector<2x128xf32>
    %317 = arith.negf %316 : vector<2x128xf32>
    %318 = math.exp %317 : vector<2x128xf32>
    %cst_54 = arith.constant 1.000000e+00 : f32
    %319 = vector.broadcast %cst_54 : f32 to vector<2x128xf32>
    %320 = arith.addf %319, %318 : vector<2x128xf32>
    %321 = arith.divf %319, %320 : vector<2x128xf32>
    %322 = math.tanh %316 : vector<2x128xf32>
    %323 = arith.select %21, %322, %321 : vector<2x128xi1>, vector<2x128xf32>
    %324 = vector.extract_strided_slice %323 {offsets = [0, 32], sizes = [2, 32], strides = [1, 1]} : vector<2x128xf32> to vector<2x32xf32>
    %325 = arith.mulf %324, %289 : vector<2x32xf32>
    %326 = vector.extract_strided_slice %323 {offsets = [0, 0], sizes = [2, 32], strides = [1, 1]} : vector<2x128xf32> to vector<2x32xf32>
    %327 = vector.extract_strided_slice %323 {offsets = [0, 64], sizes = [2, 32], strides = [1, 1]} : vector<2x128xf32> to vector<2x32xf32>
    %328 = arith.mulf %326, %327 : vector<2x32xf32>
    %329 = arith.addf %325, %328 : vector<2x32xf32>
    %330 = vector.extract_strided_slice %323 {offsets = [0, 96], sizes = [2, 32], strides = [1, 1]} : vector<2x128xf32> to vector<2x32xf32>
    %331 = math.tanh %329 : vector<2x32xf32>
    %332 = arith.mulf %330, %331 : vector<2x32xf32>
    %333 = tpu.concatenate %332, %312 in 1 : vector<2x32xf32>, vector<2x32xf32> -> vector<2x64xf32>
    %cst_55 = arith.constant dense<0.000000e+00> : vector<2x128xf32>
    %334 = tpu.matmul %333, %10, %cst_55 {dimension_numbers = #tpu.dot_dimension_numbers<[1], [0], [0], [1], [0, 0, 1, 1], [], []>} : vector<2x64xf32>, vector<64x128xf32>, vector<2x128xf32> -> vector<2x128xf32>
    %335 = vector.broadcast %12 : vector<1x128xf32> to vector<2x128xf32>
    %336 = arith.addf %334, %335 : vector<2x128xf32>
    %337 = arith.negf %336 : vector<2x128xf32>
    %338 = math.exp %337 : vector<2x128xf32>
    %cst_56 = arith.constant 1.000000e+00 : f32
    %339 = vector.broadcast %cst_56 : f32 to vector<2x128xf32>
    %340 = arith.addf %339, %338 : vector<2x128xf32>
    %341 = arith.divf %339, %340 : vector<2x128xf32>
    %342 = math.tanh %336 : vector<2x128xf32>
    %343 = arith.select %21, %342, %341 : vector<2x128xi1>, vector<2x128xf32>
    %344 = vector.extract_strided_slice %343 {offsets = [0, 32], sizes = [2, 32], strides = [1, 1]} : vector<2x128xf32> to vector<2x32xf32>
    %345 = arith.mulf %344, %309 : vector<2x32xf32>
    %346 = vector.extract_strided_slice %343 {offsets = [0, 0], sizes = [2, 32], strides = [1, 1]} : vector<2x128xf32> to vector<2x32xf32>
    %347 = vector.extract_strided_slice %343 {offsets = [0, 64], sizes = [2, 32], strides = [1, 1]} : vector<2x128xf32> to vector<2x32xf32>
    %348 = arith.mulf %346, %347 : vector<2x32xf32>
    %349 = arith.addf %345, %348 : vector<2x32xf32>
    %350 = vector.extract_strided_slice %343 {offsets = [0, 96], sizes = [2, 32], strides = [1, 1]} : vector<2x128xf32> to vector<2x32xf32>
    %351 = math.tanh %349 : vector<2x32xf32>
    %352 = arith.mulf %350, %351 : vector<2x32xf32>
    %c14 = arith.constant 14 : index
    %c0_57 = arith.constant 0 : index
    %353 = vector.load %arg10[%c14, %c0_57] : memref<16x32xf32, #tpu.memory_space<vmem>>, vector<2x32xf32>
    tpu.vector_store %arg10[%c14, %c0_57], %352 {strides = array<i32>} : memref<16x32xf32, #tpu.memory_space<vmem>>, vector<2x32xf32>,
    %c0_58 = arith.constant 0 : index
    %c0_59 = arith.constant 0 : index
    %c0_60 = arith.constant 0 : index
    %354 = vector.load %arg8[%c0_58, %c0_59, %c0_60] : memref<2x2x32xf32, #tpu.memory_space<vmem>>, vector<1x2x32xf32>
    %355 = vector.shape_cast %354 : vector<1x2x32xf32> to vector<2x32xf32>
    %356 = vector.shape_cast %332 : vector<2x32xf32> to vector<1x2x32xf32>
    tpu.vector_store %arg8[%c0_58, %c0_59, %c0_60], %356 {strides = array<i32>} : memref<2x2x32xf32, #tpu.memory_space<vmem>>, vector<1x2x32xf32>,
    %c1_61 = arith.constant 1 : index
    %c0_62 = arith.constant 0 : index
    %c0_63 = arith.constant 0 : index
    %357 = vector.load %arg8[%c1_61, %c0_62, %c0_63] : memref<2x2x32xf32, #tpu.memory_space<vmem>>, vector<1x2x32xf32>
    %358 = vector.shape_cast %357 : vector<1x2x32xf32> to vector<2x32xf32>
    %359 = vector.shape_cast %352 : vector<2x32xf32> to vector<1x2x32xf32>
    tpu.vector_store %arg8[%c1_61, %c0_62, %c0_63], %359 {strides = array<i32>} : memref<2x2x32xf32, #tpu.memory_space<vmem>>, vector<1x2x32xf32>,
    %c0_64 = arith.constant 0 : index
    %c0_65 = arith.constant 0 : index
    %c0_66 = arith.constant 0 : index
    %360 = vector.load %arg9[%c0_64, %c0_65, %c0_66] : memref<2x2x32xf32, #tpu.memory_space<vmem>>, vector<1x2x32xf32>
    %361 = vector.shape_cast %360 : vector<1x2x32xf32> to vector<2x32xf32>
    %362 = vector.shape_cast %329 : vector<2x32xf32> to vector<1x2x32xf32>
    tpu.vector_store %arg9[%c0_64, %c0_65, %c0_66], %362 {strides = array<i32>} : memref<2x2x32xf32, #tpu.memory_space<vmem>>, vector<1x2x32xf32>,
    %c1_67 = arith.constant 1 : index
    %c0_68 = arith.constant 0 : index
    %c0_69 = arith.constant 0 : index
    %363 = vector.load %arg9[%c1_67, %c0_68, %c0_69] : memref<2x2x32xf32, #tpu.memory_space<vmem>>, vector<1x2x32xf32>
    %364 = vector.shape_cast %363 : vector<1x2x32xf32> to vector<2x32xf32>
    %365 = vector.shape_cast %349 : vector<2x32xf32> to vector<1x2x32xf32>
    tpu.vector_store %arg9[%c1_67, %c0_68, %c0_69], %365 {strides = array<i32>} : memref<2x2x32xf32, #tpu.memory_space<vmem>>, vector<1x2x32xf32>,
    %c0_70 = arith.constant 0 : index
    %c0_71 = arith.constant 0 : index
    %366 = vector.load %arg10[%c0_70, %c0_71] : memref<16x32xf32, #tpu.memory_space<vmem>>, vector<16x32xf32>
    %367 = vector.broadcast %14 : vector<1x32xf32> to vector<16x32xf32>
    %368 = arith.mulf %366, %367 : vector<16x32xf32>
    %369 = vector.broadcast %15 : vector<1x32xf32> to vector<16x32xf32>
    %370 = arith.addf %368, %369 : vector<16x32xf32>
    %cst_72 = arith.constant 0.000000e+00 : f32
    %371 = vector.broadcast %cst_72 : f32 to vector<16x32xf32>
    %372 = arith.cmpf oge, %370, %371 : vector<16x32xf32>
    %cst_73 = arith.constant 0.00999999977 : f32
    %373 = vector.broadcast %cst_73 : f32 to vector<16x32xf32>
    %374 = arith.mulf %373, %370 : vector<16x32xf32>
    %375 = arith.select %372, %370, %374 : vector<16x32xi1>, vector<16x32xf32>
    %c0_74 = arith.constant 0 : index
    %c0_75 = arith.constant 0 : index
    %376 = vector.load %arg6[%c0_74, %c0_75] : memref<32x128xf32, #tpu.memory_space<vmem>>, vector<32x128xf32>
    %cst_76 = arith.constant dense<0.000000e+00> : vector<16x128xf32>
    %377 = tpu.matmul %375, %376, %cst_76 {dimension_numbers = #tpu.dot_dimension_numbers<[1], [0], [0], [1], [0, 0, 1, 1], [], []>} : vector<16x32xf32>, vector<32x128xf32>, vector<16x128xf32> -> vector<16x128xf32>
    %378 = vector.broadcast %13 : vector<1x128xf32> to vector<16x128xf32>
    %379 = arith.addf %377, %378 : vector<16x128xf32>
    %cst_77 = arith.constant dense<0xFF800000> : vector<16xf32>
    %380 = vector.multi_reduction <maximumf>, %379, %cst_77 [1] : vector<16x128xf32> to vector<16xf32>
    %381 = vector.shape_cast %380 : vector<16xf32> to vector<16x1xf32>
    %382 = vector.broadcast %381 : vector<16x1xf32> to vector<16x128xf32>
    %383 = arith.subf %379, %382 : vector<16x128xf32>
    %384 = math.exp %383 : vector<16x128xf32>
    %cst_78 = arith.constant dense<0.000000e+00> : vector<16xf32>
    %385 = vector.multi_reduction <add>, %384, %cst_78 [1] : vector<16x128xf32> to vector<16xf32>
    %386 = vector.shape_cast %385 : vector<16xf32> to vector<16x1xf32>
    %387 = tpu.reciprocal %386 : vector<16x1xf32> -> vector<16x1xf32>
    %388 = vector.broadcast %387 : vector<16x1xf32> to vector<16x128xf32>
    %389 = arith.mulf %384, %388 : vector<16x128xf32>
    %c0_79 = arith.constant 0 : index
    %c0_80 = arith.constant 0 : index
    %390 = vector.load %arg7[%c0_79, %c0_80] : memref<16x128xf32, #tpu.memory_space<vmem>>, vector<16x128xf32>
    tpu.vector_store %arg7[%c0_79, %c0_80], %389 {strides = array<i32>} : memref<16x128xf32, #tpu.memory_space<vmem>>, vector<16x128xf32>,
    return
  }
}

</mosaic_0001>

<bundles_post_ra>
// kernel: forward.1
= control target key start
LH: loop header
LB: loop body
LE: loop exit
PB: predicated region body
PF: predicated region fallthrough
CT: control target
= control target key end

     0   :  { %15 = vsyncpa [#allocation4], 0  ;;  %v2723_v2 = vmov 0   ;;  %v2724_v3 = vmov 0.0   ;;  %s3417_s0 = inlined_call_operand.vmem [shape: s32[16,1], index: 0, kind: input, shape index: {}]   ;;  %s3418_s1 = inlined_call_operand.vmem [shape: f32[16,128], index: 1, kind: input, shape index: {}]   ;;  %s3419_s2 = inlined_call_operand.vmem [shape: f32[32,128], index: 2, kind: input, shape index: {}]   ;;  %s3420_s3 = inlined_call_operand.vmem [shape: f32[64,128], index: 3, kind: input, shape index: {}]   ;;  %s3421_s4 = inlined_call_operand.vmem [shape: f32[4,32], index: 4, kind: input, shape index: {}]   ;;  %s3422_s5 = inlined_call_operand.vmem [shape: f32[4,128], index: 5, kind: input, shape index: {}]   ;;  %s3423_s6 = inlined_call_operand.vmem [shape: f32[32,128], index: 6, kind: input, shape index: {}]   ;;  %s3424_s7 = inlined_call_operand.vmem [shape: f32[16,128], index: 7, kind: output, shape index: {0}]   ;;  %s3425_s8 = inlined_call_operand.hbm [shape: f32[2,2,32], index: 8, kind: output, shape index: {1}]   ;;  %s3426_s9 = inlined_call_operand.hbm [shape: f32[2,2,32], index: 9, kind: output, shape index: {2}]  }
   0x1   :  { %v31_v0 = vld [vmem:[%s3417_s0] sm:$0xff]  ;;  %v2788_v1 = vld [vmem:[%s3419_s2 + $0x18] sm:$0xff]  ;;  %2529 = vset.pattern.permute.xlu0 %v2723_v2  ;;  %2269 = vmatprep.subr.mxu1 %v2724_v3  ;;  %v2794_v4 = vld [vmem:[%s3419_s2 + $0x10] sm:$0xff] }
   0x2   :  { %v46_v5 = vld [vmem:[%s3418_s1 + $0x8] sm:$0xff]  ;;  %36 = vperm.xlu0 %2529, %v31_v0   ;;  %2270 = vmatpush3.msra.mxu1 %v2788_v1  ;;  %v45_v6 = vld [vmem:[%s3418_s1] sm:$0xff] }
   0x3   :  { %v32_v7 = vld [vmem:[%s3417_s0 + $0x8] sm:$0xff]  ;;  %2271 = vmatprep.subr.mxu1 %v2724_v3  ;;  %2262 = vmatprep.subr.mxu0 %v46_v5 }
   0x4   :  { %v2810_v8 = vld [vmem:[%s3419_s2 + $0x8] sm:$0xff] }
   0x5   :  { %16 = vsyncpa [#allocation6], 0  ;;  %2272 = vmatpush3.msra.mxu1 %v2794_v4  ;;  %2263 = vmatpush3.msra.mxu0 %v46_v5  ;;  %v2817_v9 = vld [vmem:[%s3419_s2] sm:$0xff]  ;;  %vm165_vm0 = vcmask 261120   ;;  %vm2725_vm1 = vmmov 0   ;;  %v33_v11 = vlaneseq  ;;  %vm47_vm2 = vcmask 130048  }
   0x6   :  { %2273 = vmatprep.subr.mxu1 %v2724_v3  ;;  %2264 = vmatprep.subr.mxu0 %v45_v6  ;;  %v2102_v10 = vld [vmem:[%s3421_s4] ss:$0 sm:$0xff]  ;;  %s2726_s25 = smov 64   ;;  %v2104_v29 = vld [vmem:[%s3421_s4 + $0x2] ss:$0 sm:$0xff]  ;;  %s2727_s28 = smov 32  }
   0x7   :  { %39 = vperm.xlu0 %2529, %v32_v7   ;;  %2274 = vmatpush3.msra.mxu1 %v2810_v8  ;;  %v34_v12 = vand.u32 127, %v33_v11  ;;  %v2868_v36 = vld [vmem:[%s3420_s3 + $0x38] sm:$0xff]  ;;  %v2873_v37 = vld [vmem:[%s3420_s3 + $0x30] sm:$0xff]  ;;  %v2880_v38 = vld [vmem:[%s3420_s3 + $0x28] sm:$0xff]  ;;  %vm282_vm8 = vcmask 523264   ;;  %v2959_v51 = vshrl.u32 %v33_v11, 7 }
   0x8   :  { %2275 = vmatprep.subr.mxu1 %v2724_v3  ;;  %2265 = vmatpush3.msra.mxu0 %v45_v6  ;;  %v2887_v39 = vld [vmem:[%s3420_s3 + $0x20] sm:$0xff]  ;;  %v2894_v40 = vld [vmem:[%s3420_s3 + $0x18] sm:$0xff]  ;;  %v2901_v41 = vld [vmem:[%s3420_s3 + $0x10] sm:$0xff]  ;;  %vm1920_vm9 = vcmask 261126   ;;  %vm389_vm10 = vcmask 254976  }
   0x9   :  { %2276 = vmatpush3.msra.mxu1 %v2817_v9  ;;  %2277 = vmatprep.mubr.msk.f32.mxu1 %vm2725_vm1, %v2724_v3  ;;  %vm142_vm5 = vcmp.ge.s32.totalorder %v34_v12, 64  ;;  %vm143_vm6 = vcmp.lt.s32.totalorder %v34_v12, 96  ;;  %v2908_v43 = vld [vmem:[%s3420_s3 + $0x8] sm:$0xff]  ;;  %v2103_v44 = vld [vmem:[%s3421_s4 + $0x1] ss:$0 sm:$0xff]  ;;  %v280_v52 = vsub.s32 0, %v2959_v51 }
   0xa   :  { %2278 = vmatmul.mubr.msk.f32.vlgmr.msra.gmra.mxu1 %vm165_vm0, %v2102_v10  ;;  %2280 = vmatprep.subr.mxu0 %v2724_v3  ;;  %vm2850_vm7 = vmand %vm142_vm5, %vm143_vm6  ;;  %v2922_v45 = vld [vmem:[%s3420_s3] sm:$0xff] }
   0xb   :  { %2299 = vmatprep.subr.mxu1 %v2724_v3  ;;  %2307 = vmatprep.mubr.msk.f32.mxu1 %vm2725_vm1, %v2724_v3  ;;  %v141_v53 = vld [vmem:[%s3422_s5] sm:$0xf] }
   0xc   :  { %2300 = vmatpush3.msra.mxu1 %v2788_v1  ;;  %v2965_v54 = vrot.slane %v141_v53, %v280_v52 }
   0xd   :  { %2301 = vmatprep.subr.mxu1 %v2724_v3 }
   0xe   :  { %2302 = vmatpush3.msra.mxu1 %v2794_v4 }
   0xf   :  { %2303 = vmatprep.subr.mxu1 %v2724_v3 }
  0x10   :  { %2304 = vmatpush3.msra.mxu1 %v2810_v8 }
  0x11   :  { %2305 = vmatprep.subr.mxu1 %v2724_v3 }
  0x12   :  { %2306 = vmatpush3.msra.mxu1 %v2817_v9 }
  0x13   :  { %2310 = vmatprep.subr.mxu1 %v2724_v3 }
  0x7d   :  { %v37_v13 = vpop.permute.xlu0 %36 }
  0x7e   :  { %vm41_vm3 = vcmp.eq.s32.totalorder %v37_v13, %v34_v12 }
  0x7f   :  { %v43_v14 = vsel %vm41_vm3, 1.0, %v2724_v3 }
  0x80   :  { %2266 = vmatprep.mubr.msk.f32.mxu0 %vm47_vm2, %v43_v14 }
  0x82   :  { %v40_v15 = vpop.permute.xlu0 %39 }
  0x83   :  { %vm42_vm4 = vcmp.eq.s32.totalorder %v40_v15, %v34_v12  ;;  %v2105_v15 = vld [vmem:[%s3421_s4 + $0x3] ss:$0 sm:$0xff] }
  0x84   :  { %v44_v16 = vsel %vm42_vm4, 1.0, %v2724_v3 }
  0x85   :  { %2267 = vmatmul.mubr.msk.f32.vlgmr.msra.gmra.mxu0 %vm47_vm2, %v44_v16 }
  0x86   :  { %2296 = vmatprep.mubr.msk.f32.mxu0 %vm2725_vm1, %v2724_v3  ;;  %2281 = vmatpush3.msra.mxu0 %v2868_v36 }
  0x87   :  { %2282 = vmatprep.subr.mxu0 %v2724_v3 }
  0x88   :  { %2283 = vmatpush3.msra.mxu0 %v2873_v37 }
  0x89   :  { %2284 = vmatprep.subr.mxu0 %v2724_v3 }
  0x8a   :  { %2285 = vmatpush3.msra.mxu0 %v2880_v38 }
  0x8b   :  { %2286 = vmatprep.subr.mxu0 %v2724_v3 }
  0x8c   :  { %2287 = vmatpush3.msra.mxu0 %v2887_v39 }
  0x8d   :  { %2288 = vmatprep.subr.mxu0 %v2724_v3 }
  0x8e   :  { %2289 = vmatpush3.msra.mxu0 %v2894_v40 }
  0x8f   :  { %2290 = vmatprep.subr.mxu0 %v2724_v3 }
  0x90   :  { %2291 = vmatpush3.msra.mxu0 %v2901_v41 }
  0x91   :  { %2292 = vmatprep.subr.mxu0 %v2724_v3 }
  0x92   :  { %2293 = vmatpush3.msra.mxu0 %v2908_v43 }
  0x93   :  { %2294 = vmatprep.subr.mxu0 %v2724_v3 }
  0x94   :  { %2295 = vmatpush3.msra.mxu0 %v2922_v45 }
  0x95   :  { %2329 = vmatprep.subr.mxu0 %v2724_v3 }
  0xca   :  { %v235_v17 = vpop.f32.mrf.mxu1 }
  0xcc   :  { %v2279_v18 = vpop.f32.mrf.mxu1 }
 0x145   :  { %v2845_v19 = vpop.f32.mrf.mxu0 }
 0x147   :  { %v2847_v20 = vpop.f32.mrf.mxu0 }
 0x148   :  { %v239_v21 = vadd.f32 %v235_v17, %v2847_v20 }
 0x14a   :  { %v2107_v22 = vmul.f32 -1.442695, %v239_v21 }
 0x14c   :  { %2530 = vpow2.f32 %v2107_v22 }
 0x14d   :  { %2532 = vtanh.f32 %v239_v21 }
 0x159   :  { %v2531_v23 = vpop.eup %2530 }
 0x15a   :  { %v243_v24 = vadd.f32 1.0, %v2531_v23  ;;  %v2533_v26 = vpop.eup %2532 }
 0x15c   :  { %2534 = vrcp.f32 %v243_v24 }
 0x169   :  { %v2535_v27 = vpop.eup %2534 }
 0x16a   :  { %v247_v28 = vsel %vm2850_vm7, %v2533_v26, %v2535_v27 }
 0x16b   :  { %254 = vrot.lane.b32.xlu1 %v247_v28, %s2726_s25 }
 0x16f   :  { %249 = vrot.lane.b32.xlu1 %v2104_v29, %s2727_s28 }
 0x1dd   :  { %v255_v30 = vpop.permute.xlu1 %254 }
 0x1de   :  { %v257_v31 = vmul.f32 %v255_v30, %v247_v28 }
 0x1e0   :  { %259 = vrot.lane.b32.xlu0 %v257_v31, %s2727_s28 }
 0x1e1   :  { %v250_v32 = vpop.permute.xlu1 %249 }
 0x1e2   :  { %v252_v33 = vmul.f32 %v250_v32, %v247_v28 }
 0x252   :  { %v260_v34 = vpop.permute.xlu0 %259 }
 0x253   :  { %v2862_v35 = vadd.f32 %v260_v34, %v252_v33 }
 0x255   :  { %2536 = vtanh.f32 %v2862_v35  ;;  %v476_v23 = vrot.slane %v2862_v35, 6 }
 0x262   :  { %v2537_v42 = vpop.eup %2536 }
 0x263   :  { %265 = vrot.lane.b32.xlu1 %v2537_v42, %s2726_s25 }
 0x267   :  { %274 = vrot.lane.b32.xlu1 %v2103_v44, %s2727_s28 }
 0x2d5   :  { %v266_v46 = vpop.permute.xlu1 %265 }
 0x2d6   :  { %v268_v47 = vmul.f32 %v266_v46, %v247_v28 }
 0x2d8   :  { %270 = vrot.lane.b32.xlu0 %v268_v47, %s2727_s28 }
 0x2d9   :  { %v275_v48 = vpop.permute.xlu1 %274 }
 0x34a   :  { %v271_v49 = vpop.permute.xlu0 %270 }
 0x34b   :  { %v277_v50 = vsel %vm165_vm0, %v271_v49, %v275_v48  ;;  %2308 = vmatmul.mubr.msk.f32.vlgmr.msra.gmra.mxu1 %vm165_vm0, %v271_v49 }
 0x34c   :  { %2297 = vmatmul.mubr.msk.f32.vlgmr.msra.gmra.mxu0 %vm282_vm8, %v277_v50  ;;  %2311 = vmatpush3.msra.mxu1 %v2868_v36 }
 0x34d   :  { %2312 = vmatprep.subr.mxu1 %v2724_v3  ;;  %2330 = vmatpush3.msra.mxu0 %v2788_v1 }
 0x34e   :  { %2313 = vmatpush3.msra.mxu1 %v2873_v37  ;;  %2331 = vmatprep.subr.mxu0 %v2724_v3 }
 0x34f   :  { %2314 = vmatprep.subr.mxu1 %v2724_v3  ;;  %2332 = vmatpush3.msra.mxu0 %v2794_v4 }
 0x350   :  { %2315 = vmatpush3.msra.mxu1 %v2880_v38  ;;  %2333 = vmatprep.subr.mxu0 %v2724_v3 }
 0x351   :  { %2316 = vmatprep.subr.mxu1 %v2724_v3  ;;  %2334 = vmatpush3.msra.mxu0 %v2810_v8 }
 0x352   :  { %2317 = vmatpush3.msra.mxu1 %v2887_v39  ;;  %2335 = vmatprep.subr.mxu0 %v2724_v3 }
 0x353   :  { %2318 = vmatprep.subr.mxu1 %v2724_v3  ;;  %2326 = vmatprep.mubr.msk.f32.mxu1 %vm2725_vm1, %v2724_v3 }
 0x354   :  { %2319 = vmatpush3.msra.mxu1 %v2894_v40  ;;  %2336 = vmatpush3.msra.mxu0 %v2817_v9 }
 0x355   :  { %2320 = vmatprep.subr.mxu1 %v2724_v3  ;;  %2337 = vmatprep.mubr.msk.f32.mxu0 %vm2725_vm1, %v2724_v3 }
 0x356   :  { %2321 = vmatpush3.msra.mxu1 %v2901_v41  ;;  %2340 = vmatprep.subr.mxu0 %v2724_v3 }
 0x357   :  { %2322 = vmatprep.subr.mxu1 %v2724_v3 }
 0x358   :  { %2323 = vmatpush3.msra.mxu1 %v2908_v43 }
 0x359   :  { %2324 = vmatprep.subr.mxu1 %v2724_v3 }
 0x35a   :  { %2325 = vmatpush3.msra.mxu1 %v2922_v45 }
 0x35b   :  { %2359 = vmatprep.subr.mxu1 %v2724_v3 }
 0x40b   :  { %v459_v55 = vpop.f32.mrf.mxu1 }
 0x40c   :  { %v464_v56 = vrot.slane %v459_v55, 6  ;;  %v352_v57 = vpop.f32.mrf.mxu0 }
 0x40d   :  { %v353_v58 = vadd.f32 %v352_v57, %v2965_v54  ;;  %v2309_v59 = vpop.f32.mrf.mxu1 }
 0x40e   :  { %v466_v60 = vadd.f32 %v464_v56, %v2847_v20  ;;  %v2298_v61 = vpop.f32.mrf.mxu0 }
 0x40f   :  { %v2109_v62 = vmul.f32 -1.442695, %v353_v58 }
 0x410   :  { %v2111_v63 = vmul.f32 -1.442695, %v466_v60 }
 0x411   :  { %2538 = vpow2.f32 %v2109_v62 }
 0x412   :  { %2540 = vpow2.f32 %v2111_v63 }
 0x413   :  { %2542 = vtanh.f32 %v353_v58 }
 0x414   :  { %2544 = vtanh.f32 %v466_v60 }
 0x41e   :  { %v2539_v0 = vpop.eup %2538 }
 0x41f   :  { %v2541_v2 = vpop.eup %2540  ;;  %v359_v5 = vadd.f32 1.0, %v2539_v0 }
 0x420   :  { %v470_v6 = vadd.f32 1.0, %v2541_v2  ;;  %v2543_v7 = vpop.eup %2542 }
 0x421   :  { %2546 = vrcp.f32 %v359_v5  ;;  %v2545_v10 = vpop.eup %2544 }
 0x422   :  { %2548 = vrcp.f32 %v470_v6 }
 0x42e   :  { %v2547_v11 = vpop.eup %2546 }
 0x42f   :  { %v2549_v12 = vpop.eup %2548  ;;  %v363_v13 = vsel %vm2850_vm7, %v2543_v7, %v2547_v11 }
 0x430   :  { %370 = vrot.lane.b32.xlu0 %v363_v13, %s2726_s25  ;;  %v474_v14 = vsel %vm2850_vm7, %v2545_v10, %v2549_v12 }
 0x431   :  { %480 = vrot.lane.b32.xlu1 %v474_v14, %s2726_s25  ;;  %v478_v27 = vmul.f32 %v476_v23, %v474_v14 }
 0x434   :  { %365 = vrot.lane.b32.xlu0 %v2105_v15, %s2727_s28 }
 0x4a2   :  { %v371_v16 = vpop.permute.xlu0 %370 }
 0x4a3   :  { %v373_v17 = vmul.f32 %v371_v16, %v363_v13  ;;  %v481_v18 = vpop.permute.xlu1 %480 }
 0x4a4   :  { %v483_v21 = vmul.f32 %v481_v18, %v474_v14 }
 0x4a5   :  { %375 = vrot.lane.b32.xlu1 %v373_v17, %s2727_s28 }
 0x4a6   :  { %485 = vrot.lane.b32.xlu0 %v483_v21, %s2727_s28  ;;  %v366_v22 = vpop.permute.xlu0 %365 }
 0x4a7   :  { %v368_v24 = vmul.f32 %v366_v22, %v363_v13 }
 0x517   :  { %v376_v26 = vpop.permute.xlu1 %375 }
 0x518   :  { %v2982_v28 = vadd.f32 %v376_v26, %v368_v24  ;;  %v486_v29 = vpop.permute.xlu0 %485 }
 0x519   :  { %v2984_v30 = vadd.f32 %v486_v29, %v478_v27 }
 0x51a   :  { %2550 = vtanh.f32 %v2982_v28 }
 0x51b   :  { %2552 = vtanh.f32 %v2984_v30  ;;  %v696_v18 = vrot.slane %v2984_v30, 6 }
 0x527   :  { %v2551_v31 = vpop.eup %2550 }
 0x528   :  { %v2553_v32 = vpop.eup %2552  ;;  %381 = vrot.lane.b32.xlu1 %v2551_v31, %s2726_s25 }
 0x529   :  { %491 = vrot.lane.b32.xlu0 %v2553_v32, %s2726_s25 }
 0x59a   :  { %v382_v33 = vpop.permute.xlu1 %381 }
 0x59b   :  { %v2990_v34 = vmul.f32 %v382_v33, %v363_v13  ;;  %v492_v35 = vpop.permute.xlu0 %491 }
 0x59c   :  { %v494_v42 = vmul.f32 %v492_v35, %v474_v14 }
 0x59d   :  { %v499_v44 = vrot.slane %v2990_v34, 6 }
 0x59e   :  { %496 = vrot.lane.b32.xlu1 %v494_v42, %s2727_s28  ;;  %v608_v46 = vrot.slane %v494_v42, 2 }
 0x59f   :  { %500 = vrot.lane.b32.xlu0 %v499_v44, %s2726_s25 }
 0x5a2   :  { %609 = vrot.lane.b32.xlu1 %v608_v46, %s2727_s28 }
 0x610   :  { %v497_v47 = vpop.permute.xlu1 %496 }
 0x611   :  { %v501_v48 = vpop.permute.xlu0 %500 }
 0x612   :  { %v503_v49 = vsel %vm165_vm0, %v497_v47, %v501_v48 }
 0x613   :  { %v505_v50 = vrot.slane %v503_v49, 2 }
 0x614   :  { %v610_v52 = vpop.permute.xlu1 %609 }
 0x615   :  { %2327 = vmatmul.mubr.msk.f32.vlgmr.msra.gmra.mxu1 %vm282_vm8, %v505_v50  ;;  %2338 = vmatmul.mubr.msk.f32.vlgmr.msra.gmra.mxu0 %vm165_vm0, %v610_v52 }
 0x616   :  { %2341 = vmatpush3.msra.mxu0 %v2868_v36  ;;  %2360 = vmatpush3.msra.mxu1 %v2788_v1 }
 0x617   :  { %2342 = vmatprep.subr.mxu0 %v2724_v3  ;;  %2361 = vmatprep.subr.mxu1 %v2724_v3 }
 0x618   :  { %2343 = vmatpush3.msra.mxu0 %v2873_v37  ;;  %2362 = vmatpush3.msra.mxu1 %v2794_v4 }
 0x619   :  { %2344 = vmatprep.subr.mxu0 %v2724_v3  ;;  %2363 = vmatprep.subr.mxu1 %v2724_v3 }
 0x61a   :  { %2345 = vmatpush3.msra.mxu0 %v2880_v38  ;;  %2364 = vmatpush3.msra.mxu1 %v2810_v8 }
 0x61b   :  { %2346 = vmatprep.subr.mxu0 %v2724_v3  ;;  %2356 = vmatprep.mubr.msk.f32.mxu0 %vm2725_vm1, %v2724_v3 }
 0x61c   :  { %2347 = vmatpush3.msra.mxu0 %v2887_v39  ;;  %2365 = vmatprep.subr.mxu1 %v2724_v3 }
 0x61d   :  { %2348 = vmatprep.subr.mxu0 %v2724_v3  ;;  %2366 = vmatpush3.msra.mxu1 %v2817_v9 }
 0x61e   :  { %2349 = vmatpush3.msra.mxu0 %v2894_v40  ;;  %2367 = vmatprep.mubr.msk.f32.mxu1 %vm2725_vm1, %v2724_v3 }
 0x61f   :  { %2350 = vmatprep.subr.mxu0 %v2724_v3  ;;  %2370 = vmatprep.subr.mxu1 %v2724_v3 }
 0x620   :  { %2351 = vmatpush3.msra.mxu0 %v2901_v41 }
 0x621   :  { %2352 = vmatprep.subr.mxu0 %v2724_v3 }
 0x622   :  { %2353 = vmatpush3.msra.mxu0 %v2908_v43 }
 0x623   :  { %2354 = vmatprep.subr.mxu0 %v2724_v3 }
 0x624   :  { %2355 = vmatpush3.msra.mxu0 %v2922_v45 }
 0x625   :  { %2389 = vmatprep.subr.mxu0 %v2724_v3 }
 0x6d5   :  { %v574_v53 = vpop.f32.mrf.mxu1  ;;  %v679_v55 = vpop.f32.mrf.mxu0 }
 0x6d6   :  { %v575_v56 = vadd.f32 %v574_v53, %v2965_v54  ;;  %v684_v57 = vrot.slane %v679_v55, 4 }
 0x6d7   :  { %v2328_v58 = vpop.f32.mrf.mxu1  ;;  %v2339_v59 = vpop.f32.mrf.mxu0 }
 0x6d8   :  { %v2113_v60 = vmul.f32 -1.442695, %v575_v56  ;;  %v686_v61 = vadd.f32 %v684_v57, %v2847_v20 }
 0x6da   :  { %2554 = vpow2.f32 %v2113_v60  ;;  %v2115_v62 = vmul.f32 -1.442695, %v686_v61 }
 0x6dc   :  { %2556 = vpow2.f32 %v2115_v62 }
 0x6dd   :  { %2558 = vtanh.f32 %v575_v56 }
 0x6e7   :  { %v2555_v63 = vpop.eup %2554 }
 0x6e8   :  { %v581_v0 = vadd.f32 1.0, %v2555_v63 }
 0x6e9   :  { %v2557_v2 = vpop.eup %2556 }
 0x6ea   :  { %2560 = vrcp.f32 %v581_v0  ;;  %v690_v5 = vadd.f32 1.0, %v2557_v2  ;;  %v2559_v6 = vpop.eup %2558 }
 0x6eb   :  { %2562 = vtanh.f32 %v686_v61 }
 0x6ec   :  { %2564 = vrcp.f32 %v690_v5 }
 0x6f7   :  { %v2561_v7 = vpop.eup %2560 }
 0x6f8   :  { %v2563_v10 = vpop.eup %2562  ;;  %v585_v11 = vsel %vm2850_vm7, %v2559_v6, %v2561_v7 }
 0x6f9   :  { %v2565_v12 = vpop.eup %2564  ;;  %588 = vrot.lane.b32.xlu0 %v585_v11, %s2726_s25  ;;  %v586_v21 = vmul.f32 %v585_v11, %v2982_v28 }
 0x6fa   :  { %v694_v13 = vsel %vm2850_vm7, %v2563_v10, %v2565_v12 }
 0x6fb   :  { %700 = vrot.lane.b32.xlu1 %v694_v13, %s2726_s25  ;;  %v698_v24 = vmul.f32 %v696_v18, %v694_v13 }
 0x76b   :  { %v589_v14 = vpop.permute.xlu0 %588 }
 0x76c   :  { %v591_v15 = vmul.f32 %v589_v14, %v585_v11 }
 0x76d   :  { %v701_v16 = vpop.permute.xlu1 %700 }
 0x76e   :  { %v703_v17 = vmul.f32 %v701_v16, %v694_v13  ;;  %593 = vrot.lane.b32.xlu0 %v591_v15, %s2727_s28 }
 0x770   :  { %705 = vrot.lane.b32.xlu1 %v703_v17, %s2727_s28 }
 0x7e0   :  { %v594_v22 = vpop.permute.xlu0 %593 }
 0x7e1   :  { %v3039_v23 = vadd.f32 %v594_v22, %v586_v21 }
 0x7e2   :  { %v706_v26 = vpop.permute.xlu1 %705 }
 0x7e3   :  { %2566 = vtanh.f32 %v3039_v23  ;;  %v3042_v27 = vadd.f32 %v706_v26, %v698_v24 }
 0x7e5   :  { %2568 = vtanh.f32 %v3042_v27  ;;  %v916_v16 = vrot.slane %v3042_v27, 6 }
 0x7f0   :  { %v2567_v29 = vpop.eup %2566 }
 0x7f1   :  { %599 = vrot.lane.b32.xlu0 %v2567_v29, %s2726_s25 }
 0x7f2   :  { %v2569_v31 = vpop.eup %2568 }
 0x7f3   :  { %711 = vrot.lane.b32.xlu1 %v2569_v31, %s2726_s25 }
 0x863   :  { %v600_v30 = vpop.permute.xlu0 %599 }
 0x864   :  { %v3047_v32 = vmul.f32 %v600_v30, %v585_v11 }
 0x865   :  { %v712_v28 = vpop.permute.xlu1 %711 }
 0x866   :  { %v719_v33 = vrot.slane %v3047_v32, 4  ;;  %v714_v35 = vmul.f32 %v712_v28, %v694_v13 }
 0x868   :  { %720 = vrot.lane.b32.xlu1 %v719_v33, %s2726_s25  ;;  %716 = vrot.lane.b32.xlu0 %v714_v35, %s2727_s28  ;;  %v828_v42 = vrot.slane %v714_v35, 4 }
 0x86c   :  { %829 = vrot.lane.b32.xlu0 %v828_v42, %s2727_s28 }
 0x8da   :  { %v717_v44 = vpop.permute.xlu0 %716  ;;  %v721_v46 = vpop.permute.xlu1 %720 }
 0x8db   :  { %v723_v47 = vsel %vm165_vm0, %v717_v44, %v721_v46 }
 0x8dc   :  { %v725_v48 = vrot.slane %v723_v47, 4 }
 0x8de   :  { %v830_v49 = vpop.permute.xlu0 %829  ;;  %2357 = vmatmul.mubr.msk.f32.vlgmr.msra.gmra.mxu0 %vm282_vm8, %v725_v48 }
 0x8df   :  { %2368 = vmatmul.mubr.msk.f32.vlgmr.msra.gmra.mxu1 %vm165_vm0, %v830_v49  ;;  %2390 = vmatpush3.msra.mxu0 %v2788_v1 }
 0x8e0   :  { %2371 = vmatpush3.msra.mxu1 %v2868_v36  ;;  %2391 = vmatprep.subr.mxu0 %v2724_v3 }
 0x8e1   :  { %2372 = vmatprep.subr.mxu1 %v2724_v3  ;;  %2392 = vmatpush3.msra.mxu0 %v2794_v4 }
 0x8e2   :  { %2373 = vmatpush3.msra.mxu1 %v2873_v37  ;;  %2393 = vmatprep.subr.mxu0 %v2724_v3 }
 0x8e3   :  { %2374 = vmatprep.subr.mxu1 %v2724_v3  ;;  %2394 = vmatpush3.msra.mxu0 %v2810_v8 }
 0x8e4   :  { %2375 = vmatpush3.msra.mxu1 %v2880_v38  ;;  %2386 = vmatprep.mubr.msk.f32.mxu1 %vm2725_vm1, %v2724_v3 }
 0x8e5   :  { %2376 = vmatprep.subr.mxu1 %v2724_v3  ;;  %2395 = vmatprep.subr.mxu0 %v2724_v3 }
 0x8e6   :  { %2377 = vmatpush3.msra.mxu1 %v2887_v39  ;;  %2396 = vmatpush3.msra.mxu0 %v2817_v9 }
 0x8e7   :  { %2378 = vmatprep.subr.mxu1 %v2724_v3  ;;  %2397 = vmatprep.mubr.msk.f32.mxu0 %vm2725_vm1, %v2724_v3 }
 0x8e8   :  { %2379 = vmatpush3.msra.mxu1 %v2894_v40  ;;  %2400 = vmatprep.subr.mxu0 %v2724_v3 }
 0x8e9   :  { %2380 = vmatprep.subr.mxu1 %v2724_v3 }
 0x8ea   :  { %2381 = vmatpush3.msra.mxu1 %v2901_v41 }
 0x8eb   :  { %2382 = vmatprep.subr.mxu1 %v2724_v3 }
 0x8ec   :  { %2383 = vmatpush3.msra.mxu1 %v2908_v43 }
 0x8ed   :  { %2384 = vmatprep.subr.mxu1 %v2724_v3 }
 0x8ee   :  { %2385 = vmatpush3.msra.mxu1 %v2922_v45 }
 0x8ef   :  { %2419 = vmatprep.subr.mxu1 %v2724_v3 }
 0x99e   :  { %v794_v50 = vpop.f32.mrf.mxu0 }
 0x99f   :  { %v795_v52 = vadd.f32 %v794_v50, %v2965_v54  ;;  %v899_v53 = vpop.f32.mrf.mxu1 }
 0x9a0   :  { %v904_v55 = vrot.slane %v899_v53, 2  ;;  %v2358_v56 = vpop.f32.mrf.mxu0 }
 0x9a1   :  { %v2117_v57 = vmul.f32 -1.442695, %v795_v52  ;;  %v2369_v58 = vpop.f32.mrf.mxu1 }
 0x9a2   :  { %v906_v59 = vadd.f32 %v904_v55, %v2847_v20 }
 0x9a3   :  { %2570 = vpow2.f32 %v2117_v57 }
 0x9a4   :  { %v2119_v60 = vmul.f32 -1.442695, %v906_v59 }
 0x9a6   :  { %2572 = vpow2.f32 %v2119_v60 }
 0x9a7   :  { %2574 = vtanh.f32 %v795_v52 }
 0x9b0   :  { %v2571_v61 = vpop.eup %2570 }
 0x9b1   :  { %v801_v62 = vadd.f32 1.0, %v2571_v61 }
 0x9b3   :  { %v2573_v63 = vpop.eup %2572  ;;  %2576 = vrcp.f32 %v801_v62 }
 0x9b4   :  { %v910_v0 = vadd.f32 1.0, %v2573_v63  ;;  %2578 = vtanh.f32 %v906_v59  ;;  %v2575_v2 = vpop.eup %2574 }
 0x9b6   :  { %2580 = vrcp.f32 %v910_v0 }
 0x9c0   :  { %v2577_v5 = vpop.eup %2576 }
 0x9c1   :  { %v805_v6 = vsel %vm2850_vm7, %v2575_v2, %v2577_v5  ;;  %v2579_v7 = vpop.eup %2578 }
 0x9c2   :  { %808 = vrot.lane.b32.xlu1 %v805_v6, %s2726_s25  ;;  %v806_v15 = vmul.f32 %v805_v6, %v3039_v23 }
 0x9c3   :  { %v2581_v20 = vpop.eup %2580 }
 0x9c4   :  { %v914_v10 = vsel %vm2850_vm7, %v2579_v7, %v2581_v20 }
 0x9c5   :  { %920 = vrot.lane.b32.xlu0 %v914_v10, %s2726_s25  ;;  %v918_v21 = vmul.f32 %v916_v16, %v914_v10 }
 0xa34   :  { %v809_v11 = vpop.permute.xlu1 %808 }
 0xa35   :  { %v811_v12 = vmul.f32 %v809_v11, %v805_v6 }
 0xa37   :  { %v921_v13 = vpop.permute.xlu0 %920  ;;  %813 = vrot.lane.b32.xlu1 %v811_v12, %s2727_s28 }
 0xa38   :  { %v923_v14 = vmul.f32 %v921_v13, %v914_v10 }
 0xa3a   :  { %925 = vrot.lane.b32.xlu0 %v923_v14, %s2727_s28 }
 0xaa9   :  { %v814_v17 = vpop.permute.xlu1 %813 }
 0xaaa   :  { %v3096_v18 = vadd.f32 %v814_v17, %v806_v15 }
 0xaac   :  { %2582 = vtanh.f32 %v3096_v18  ;;  %v926_v22 = vpop.permute.xlu0 %925 }
 0xaad   :  { %v3099_v24 = vadd.f32 %v926_v22, %v918_v21 }
 0xaaf   :  { %2584 = vtanh.f32 %v3099_v24  ;;  %v1133_v12 = vrot.slane %v3099_v24, 6 }
 0xab9   :  { %v2583_v26 = vpop.eup %2582 }
 0xaba   :  { %819 = vrot.lane.b32.xlu1 %v2583_v26, %s2726_s25 }
 0xabc   :  { %v2585_v29 = vpop.eup %2584 }
 0xabd   :  { %931 = vrot.lane.b32.xlu0 %v2585_v29, %s2726_s25 }
 0xb2c   :  { %v820_v23 = vpop.permute.xlu1 %819 }
 0xb2d   :  { %v3104_v31 = vmul.f32 %v820_v23, %v805_v6 }
 0xb2f   :  { %v939_v27 = vrot.slane %v3104_v31, 2  ;;  %v932_v30 = vpop.permute.xlu0 %931 }
 0xb30   :  { %v934_v28 = vmul.f32 %v932_v30, %v914_v10 }
 0xb31   :  { %940 = vrot.lane.b32.xlu0 %v939_v27, %s2726_s25 }
 0xb32   :  { %936 = vrot.lane.b32.xlu1 %v934_v28, %s2727_s28  ;;  %v1048_v33 = vrot.slane %v934_v28, 6 }
 0xb36   :  { %1049 = vrot.lane.b32.xlu1 %v1048_v33, %s2727_s28 }
 0xba3   :  { %v941_v35 = vpop.permute.xlu0 %940 }
 0xba4   :  { %v937_v42 = vpop.permute.xlu1 %936 }
 0xba5   :  { %v943_v44 = vsel %vm165_vm0, %v937_v42, %v941_v35 }
 0xba6   :  { %v945_v46 = vrot.slane %v943_v44, 6 }
 0xba8   :  { %2387 = vmatmul.mubr.msk.f32.vlgmr.msra.gmra.mxu1 %vm282_vm8, %v945_v46  ;;  %v1050_v47 = vpop.permute.xlu1 %1049 }
 0xba9   :  { %2398 = vmatmul.mubr.msk.f32.vlgmr.msra.gmra.mxu0 %vm165_vm0, %v1050_v47  ;;  %2420 = vmatpush3.msra.mxu1 %v2788_v1 }
 0xbaa   :  { %2401 = vmatpush3.msra.mxu0 %v2868_v36  ;;  %2421 = vmatprep.subr.mxu1 %v2724_v3 }
 0xbab   :  { %2402 = vmatprep.subr.mxu0 %v2724_v3  ;;  %2422 = vmatpush3.msra.mxu1 %v2794_v4 }
 0xbac   :  { %2403 = vmatpush3.msra.mxu0 %v2873_v37  ;;  %2423 = vmatprep.subr.mxu1 %v2724_v3 }
 0xbad   :  { %2404 = vmatprep.subr.mxu0 %v2724_v3  ;;  %2424 = vmatpush3.msra.mxu1 %v2810_v8 }
 0xbae   :  { %2405 = vmatpush3.msra.mxu0 %v2880_v38  ;;  %2425 = vmatprep.subr.mxu1 %v2724_v3 }
 0xbaf   :  { %2406 = vmatprep.subr.mxu0 %v2724_v3  ;;  %2426 = vmatpush3.msra.mxu1 %v2817_v9 }
 0xbb0   :  { %2407 = vmatpush3.msra.mxu0 %v2887_v39  ;;  %2427 = vmatprep.mubr.msk.f32.mxu1 %vm2725_vm1, %v2724_v3 }
 0xbb1   :  { %2408 = vmatprep.subr.mxu0 %v2724_v3  ;;  %2416 = vmatprep.mubr.msk.f32.mxu0 %vm2725_vm1, %v2724_v3 }
 0xbb2   :  { %2409 = vmatpush3.msra.mxu0 %v2894_v40  ;;  %2430 = vmatprep.subr.mxu1 %v2724_v3 }
 0xbb3   :  { %2410 = vmatprep.subr.mxu0 %v2724_v3 }
 0xbb4   :  { %2411 = vmatpush3.msra.mxu0 %v2901_v41 }
 0xbb5   :  { %2412 = vmatprep.subr.mxu0 %v2724_v3 }
 0xbb6   :  { %2413 = vmatpush3.msra.mxu0 %v2908_v43 }
 0xbb7   :  { %2414 = vmatprep.subr.mxu0 %v2724_v3 }
 0xbb8   :  { %2415 = vmatpush3.msra.mxu0 %v2922_v45 }
 0xbb9   :  { %2449 = vmatprep.subr.mxu0 %v2724_v3 }
 0xc68   :  { %v1014_v48 = vpop.f32.mrf.mxu1 }
 0xc69   :  { %v1015_v49 = vadd.f32 %v1014_v48, %v2965_v54  ;;  %v1119_v50 = vpop.f32.mrf.mxu0 }
 0xc6a   :  { %v1123_v52 = vadd.f32 %v2845_v19, %v1119_v50  ;;  %v2388_v53 = vpop.f32.mrf.mxu1 }
 0xc6b   :  { %v2121_v55 = vmul.f32 -1.442695, %v1015_v49  ;;  %v2399_v56 = vpop.f32.mrf.mxu0 }
 0xc6c   :  { %v2123_v57 = vmul.f32 -1.442695, %v1123_v52 }
 0xc6d   :  { %2586 = vpow2.f32 %v2121_v55 }
 0xc6e   :  { %2588 = vpow2.f32 %v2123_v57 }
 0xc6f   :  { %2590 = vtanh.f32 %v1015_v49 }
 0xc70   :  { %2592 = vtanh.f32 %v1123_v52 }
 0xc7a   :  { %v2587_v58 = vpop.eup %2586 }
 0xc7b   :  { %v2589_v59 = vpop.eup %2588  ;;  %v1021_v60 = vadd.f32 1.0, %v2587_v58 }
 0xc7c   :  { %v1127_v61 = vadd.f32 1.0, %v2589_v59  ;;  %v2591_v62 = vpop.eup %2590 }
 0xc7d   :  { %2594 = vrcp.f32 %v1021_v60  ;;  %v2593_v63 = vpop.eup %2592 }
 0xc7e   :  { %2596 = vrcp.f32 %v1127_v61 }
 0xc8a   :  { %v2595_v0 = vpop.eup %2594 }
 0xc8b   :  { %v2597_v2 = vpop.eup %2596  ;;  %v1025_v5 = vsel %vm2850_vm7, %v2591_v62, %v2595_v0 }
 0xc8c   :  { %1028 = vrot.lane.b32.xlu0 %v1025_v5, %s2726_s25  ;;  %v1131_v6 = vsel %vm2850_vm7, %v2593_v63, %v2597_v2  ;;  %v1026_v13 = vmul.f32 %v1025_v5, %v3096_v18 }
 0xc8d   :  { %1137 = vrot.lane.b32.xlu1 %v1131_v6, %s2726_s25  ;;  %v1135_v15 = vmul.f32 %v1133_v12, %v1131_v6 }
 0xcfe   :  { %v1029_v7 = vpop.permute.xlu0 %1028 }
 0xcff   :  { %v1031_v20 = vmul.f32 %v1029_v7, %v1025_v5  ;;  %v1138_v10 = vpop.permute.xlu1 %1137 }
 0xd00   :  { %v1140_v11 = vmul.f32 %v1138_v10, %v1131_v6 }
 0xd01   :  { %1033 = vrot.lane.b32.xlu0 %v1031_v20, %s2727_s28 }
 0xd02   :  { %1142 = vrot.lane.b32.xlu1 %v1140_v11, %s2727_s28 }
 0xd73   :  { %v1034_v14 = vpop.permute.xlu0 %1033 }
 0xd74   :  { %v3153_v16 = vadd.f32 %v1034_v14, %v1026_v13  ;;  %v1143_v17 = vpop.permute.xlu1 %1142 }
 0xd75   :  { %v3155_v21 = vadd.f32 %v1143_v17, %v1135_v15 }
 0xd76   :  { %2598 = vtanh.f32 %v3153_v16 }
 0xd77   :  { %2600 = vtanh.f32 %v3155_v21  ;;  %v1348_v63 = vrot.slane %v3155_v21, 6 }
 0xd83   :  { %v2599_v22 = vpop.eup %2598 }
 0xd84   :  { %v2601_v26 = vpop.eup %2600  ;;  %1039 = vrot.lane.b32.xlu0 %v2599_v22, %s2726_s25 }
 0xd85   :  { %1148 = vrot.lane.b32.xlu1 %v2601_v26, %s2726_s25 }
 0xdf6   :  { %v1040_v24 = vpop.permute.xlu0 %1039 }
 0xdf7   :  { %v3161_v29 = vmul.f32 %v1040_v24, %v1025_v5  ;;  %v1149_v18 = vpop.permute.xlu1 %1148 }
 0xdf8   :  { %v1151_v23 = vmul.f32 %v1149_v18, %v1131_v6 }
 0xdf9   :  { %1156 = vrot.lane.b32.xlu1 %v3161_v29, %s2726_s25 }
 0xdfa   :  { %1153 = vrot.lane.b32.xlu0 %v1151_v23, %s2727_s28  ;;  %v2666_v23 = vld [vmem:[%s3419_s2 + $0x18] sm:$0xff] }
 0xe6b   :  { %v1157_v27 = vpop.permute.xlu1 %1156 }
 0xe6c   :  { %v1154_v30 = vpop.permute.xlu0 %1153 }
 0xe6d   :  { %v1159_v28 = vsel %vm165_vm0, %v1154_v30, %v1157_v27  ;;  %2428 = vmatmul.mubr.msk.f32.vlgmr.msra.gmra.mxu1 %vm165_vm0, %v1154_v30  ;;  %v2667_v27 = vld [vmem:[%s3419_s2 + $0x10] sm:$0xff] }
 0xe6e   :  { %2417 = vmatmul.mubr.msk.f32.vlgmr.msra.gmra.mxu0 %vm282_vm8, %v1159_v28  ;;  %2431 = vmatpush3.msra.mxu1 %v2868_v36 }
 0xe6f   :  { %2432 = vmatprep.subr.mxu1 %v2724_v3  ;;  %2450 = vmatpush3.msra.mxu0 %v2788_v1 }
 0xe70   :  { %2433 = vmatpush3.msra.mxu1 %v2873_v37  ;;  %2451 = vmatprep.subr.mxu0 %v2724_v3 }
 0xe71   :  { %2434 = vmatprep.subr.mxu1 %v2724_v3  ;;  %2452 = vmatpush3.msra.mxu0 %v2794_v4 }
 0xe72   :  { %2435 = vmatpush3.msra.mxu1 %v2880_v38  ;;  %2453 = vmatprep.subr.mxu0 %v2724_v3 }
 0xe73   :  { %2436 = vmatprep.subr.mxu1 %v2724_v3  ;;  %2454 = vmatpush3.msra.mxu0 %v2810_v8 }
 0xe74   :  { %2437 = vmatpush3.msra.mxu1 %v2887_v39  ;;  %2455 = vmatprep.subr.mxu0 %v2724_v3 }
 0xe75   :  { %2438 = vmatprep.subr.mxu1 %v2724_v3  ;;  %2446 = vmatprep.mubr.msk.f32.mxu1 %vm2725_vm1, %v2724_v3 }
 0xe76   :  { %2439 = vmatpush3.msra.mxu1 %v2894_v40  ;;  %2456 = vmatpush3.msra.mxu0 %v2817_v9 }
 0xe77   :  { %2440 = vmatprep.subr.mxu1 %v2724_v3  ;;  %2457 = vmatprep.mubr.msk.f32.mxu0 %vm2725_vm1, %v2724_v3 }
 0xe78   :  { %2441 = vmatpush3.msra.mxu1 %v2901_v41  ;;  %2460 = vmatprep.subr.mxu0 %v2724_v3 }
 0xe79   :  { %2442 = vmatprep.subr.mxu1 %v2724_v3 }
 0xe7a   :  { %2443 = vmatpush3.msra.mxu1 %v2908_v43 }
 0xe7b   :  { %2444 = vmatprep.subr.mxu1 %v2724_v3 }
 0xe7c   :  { %2445 = vmatpush3.msra.mxu1 %v2922_v45 }
 0xe7d   :  { %2479 = vmatprep.subr.mxu1 %v2724_v3 }
 0xf2d   :  { %v1331_v1 = vpop.f32.mrf.mxu1 }
 0xf2e   :  { %v1336_v4 = vrot.slane %v1331_v1, 6  ;;  %v1229_v8 = vpop.f32.mrf.mxu0 }
 0xf2f   :  { %v1230_v9 = vadd.f32 %v1229_v8, %v2965_v54  ;;  %v2429_v33 = vpop.f32.mrf.mxu1 }
 0xf30   :  { %v1338_v35 = vadd.f32 %v2845_v19, %v1336_v4  ;;  %v2418_v42 = vpop.f32.mrf.mxu0 }
 0xf31   :  { %v2125_v44 = vmul.f32 -1.442695, %v1230_v9 }
 0xf32   :  { %v2127_v46 = vmul.f32 -1.442695, %v1338_v35 }
 0xf33   :  { %2602 = vpow2.f32 %v2125_v44 }
 0xf34   :  { %2604 = vpow2.f32 %v2127_v46 }
 0xf35   :  { %2606 = vtanh.f32 %v1230_v9 }
 0xf36   :  { %2608 = vtanh.f32 %v1338_v35 }
 0xf40   :  { %v2603_v47 = vpop.eup %2602 }
 0xf41   :  { %v2605_v48 = vpop.eup %2604  ;;  %v1236_v49 = vadd.f32 1.0, %v2603_v47 }
 0xf42   :  { %v1342_v50 = vadd.f32 1.0, %v2605_v48  ;;  %v2607_v52 = vpop.eup %2606 }
 0xf43   :  { %2610 = vrcp.f32 %v1236_v49  ;;  %v2609_v53 = vpop.eup %2608 }
 0xf44   :  { %2612 = vrcp.f32 %v1342_v50 }
 0xf50   :  { %v2611_v55 = vpop.eup %2610 }
 0xf51   :  { %v2613_v56 = vpop.eup %2612  ;;  %v1240_v57 = vsel %vm2850_vm7, %v2607_v52, %v2611_v55 }
 0xf52   :  { %1243 = vrot.lane.b32.xlu0 %v1240_v57, %s2726_s25  ;;  %v1346_v58 = vsel %vm2850_vm7, %v2609_v53, %v2613_v56  ;;  %v1241_v0 = vmul.f32 %v1240_v57, %v3153_v16 }
 0xf53   :  { %1352 = vrot.lane.b32.xlu1 %v1346_v58, %s2726_s25  ;;  %v1350_v5 = vmul.f32 %v1348_v63, %v1346_v58 }
 0xfc4   :  { %v1244_v59 = vpop.permute.xlu0 %1243 }
 0xfc5   :  { %v1246_v60 = vmul.f32 %v1244_v59, %v1240_v57  ;;  %v1353_v61 = vpop.permute.xlu1 %1352 }
 0xfc6   :  { %v1355_v62 = vmul.f32 %v1353_v61, %v1346_v58 }
 0xfc7   :  { %1248 = vrot.lane.b32.xlu0 %v1246_v60, %s2727_s28 }
 0xfc8   :  { %1357 = vrot.lane.b32.xlu1 %v1355_v62, %s2727_s28 }
0x1039   :  { %v1249_v2 = vpop.permute.xlu0 %1248 }
0x103a   :  { %v3209_v6 = vadd.f32 %v1249_v2, %v1241_v0  ;;  %v1358_v7 = vpop.permute.xlu1 %1357 }
0x103b   :  { %v3211_v20 = vadd.f32 %v1358_v7, %v1350_v5 }
0x103c   :  { %2614 = vtanh.f32 %v3209_v6 }
0x103d   :  { %2616 = vtanh.f32 %v3211_v20  ;;  %v1568_v55 = vrot.slane %v3211_v20, 6 }
0x1049   :  { %v2615_v10 = vpop.eup %2614 }
0x104a   :  { %v2617_v11 = vpop.eup %2616  ;;  %1254 = vrot.lane.b32.xlu0 %v2615_v10, %s2726_s25 }
0x104b   :  { %1363 = vrot.lane.b32.xlu1 %v2617_v11, %s2726_s25 }
0x10bc   :  { %v1255_v12 = vpop.permute.xlu0 %1254 }
0x10bd   :  { %v3217_v13 = vmul.f32 %v1255_v12, %v1240_v57  ;;  %v1364_v14 = vpop.permute.xlu1 %1363 }
0x10be   :  { %v1366_v15 = vmul.f32 %v1364_v14, %v1346_v58 }
0x10bf   :  { %v1371_v16 = vrot.slane %v3217_v13, 6 }
0x10c0   :  { %1368 = vrot.lane.b32.xlu0 %v1366_v15, %s2727_s28  ;;  %v1480_v17 = vrot.slane %v1366_v15, 2 }
0x10c1   :  { %1372 = vrot.lane.b32.xlu1 %v1371_v16, %s2726_s25  ;;  %v2670_v16 = vld [vmem:[%s3420_s3 + $0x38] sm:$0xff] }
0x10c4   :  { %1481 = vrot.lane.b32.xlu0 %v1480_v17, %s2727_s28  ;;  %v2671_v17 = vld [vmem:[%s3420_s3 + $0x30] sm:$0xff] }
0x1132   :  { %v1369_v21 = vpop.permute.xlu0 %1368 }
0x1133   :  { %v1373_v22 = vpop.permute.xlu1 %1372 }
0x1134   :  { %v1375_v26 = vsel %vm165_vm0, %v1369_v21, %v1373_v22  ;;  %v2672_v21 = vld [vmem:[%s3420_s3 + $0x28] sm:$0xff]  ;;  %v2673_v22 = vld [vmem:[%s3420_s3 + $0x20] sm:$0xff] }
0x1135   :  { %v1377_v24 = vrot.slane %v1375_v26, 2  ;;  %v2674_v26 = vld [vmem:[%s3420_s3 + $0x18] sm:$0xff] }
0x1136   :  { %v1482_v18 = vpop.permute.xlu0 %1481 }
0x1137   :  { %2447 = vmatmul.mubr.msk.f32.vlgmr.msra.gmra.mxu1 %vm282_vm8, %v1377_v24  ;;  %2458 = vmatmul.mubr.msk.f32.vlgmr.msra.gmra.mxu0 %vm165_vm0, %v1482_v18  ;;  %v2675_v24 = vld [vmem:[%s3420_s3 + $0x10] sm:$0xff]  ;;  %v2676_v18 = vld [vmem:[%s3420_s3 + $0x8] sm:$0xff] }
0x1138   :  { %2461 = vmatpush3.msra.mxu0 %v2868_v36  ;;  %2480 = vmatpush3.msra.mxu1 %v2666_v23  ;;  %v2668_v36 = vld [vmem:[%s3419_s2 + $0x8] sm:$0xff]  ;;  %v2677_v23 = vld [vmem:[%s3420_s3] sm:$0xff] }
0x1139   :  { %2462 = vmatprep.subr.mxu0 %v2724_v3  ;;  %2481 = vmatprep.subr.mxu1 %v2724_v3 }
0x113a   :  { %2463 = vmatpush3.msra.mxu0 %v2873_v37  ;;  %2482 = vmatpush3.msra.mxu1 %v2667_v27  ;;  %v2669_v37 = vld [vmem:[%s3419_s2] sm:$0xff]  ;;  %s2729_s2 = smov [#allocation3]  }
0x113b   :  { %2464 = vmatprep.subr.mxu0 %v2724_v3  ;;  %2483 = vmatprep.subr.mxu1 %v2724_v3  ;;  %s2071_s16 = sshll.u32 %s2729_s2, 4  ;;  %s2072_s16 = int_to_ptr.vmem [resolvable:$true] %s2071_s16 }
0x113c   :  { %2465 = vmatpush3.msra.mxu0 %v2880_v38  ;;  %2484 = vmatpush3.msra.mxu1 %v2668_v36  ;;  %s2679_s17 = scalar_lea.vmem %s2072_s16, 64  ;;  %p2684_p1 = scmp.lt.s32.totalorder %s2072_s16, %s2072_s16 }
0x113d   :  { %2466 = vmatprep.subr.mxu0 %v2724_v3  ;;  %2476 = vmatprep.mubr.msk.f32.mxu0 %vm2725_vm1, %v2724_v3  ;;  %p2680_p0 = scmp.ne.s32.totalorder %s2072_s16, %s2679_s17  ;;  %p2685_p2 = scmp.lt.s32.totalorder %s2679_s17, %s2679_s17 }
0x113e   :  { %2467 = vmatpush3.msra.mxu0 %v2887_v39  ;;  %2485 = vmatprep.subr.mxu1 %v2724_v3 }
0x113f   :  { %2468 = vmatprep.subr.mxu0 %v2724_v3  ;;  %2486 = vmatpush3.msra.mxu1 %v2669_v37  ;;  %p2686_p3 = por %p2685_p2, %p2684_p1 }
0x1140   :  { %2469 = vmatpush3.msra.mxu0 %v2894_v40  ;;  %2487 = vmatprep.mubr.msk.f32.mxu1 %vm2725_vm1, %v2724_v3 }
0x1141   :  { %2470 = vmatprep.subr.mxu0 %v2724_v3  ;;  %2490 = vmatprep.subr.mxu1 %v2724_v3  ;;  %p2687_p4 = pnand %p2686_p3, %p2680_p0 }
0x1142   :  { %2471 = vmatpush3.msra.mxu0 %v2901_v41 }
0x1143   :  { %2472 = vmatprep.subr.mxu0 %v2724_v3 }
0x1144   :  { %2473 = vmatpush3.msra.mxu0 %v2908_v43 }
0x1145   :  { %2474 = vmatprep.subr.mxu0 %v2724_v3 }
0x1146   :  { %2475 = vmatpush3.msra.mxu0 %v2922_v45 }
0x11f7   :  { %v1446_v38 = vpop.f32.mrf.mxu1  ;;  %v1551_v39 = vpop.f32.mrf.mxu0 }
0x11f8   :  { %v1447_v40 = vadd.f32 %v1446_v38, %v2965_v54  ;;  %v1556_v30 = vrot.slane %v1551_v39, 4 }
0x11f9   :  { %v2448_v28 = vpop.f32.mrf.mxu1  ;;  %v2459_v1 = vpop.f32.mrf.mxu0 }
0x11fa   :  { %v2129_v4 = vmul.f32 -1.442695, %v1447_v40  ;;  %v1558_v8 = vadd.f32 %v2845_v19, %v1556_v30 }
0x11fc   :  { %2618 = vpow2.f32 %v2129_v4  ;;  %v2131_v41 = vmul.f32 -1.442695, %v1558_v8 }
0x11fe   :  { %2620 = vpow2.f32 %v2131_v41 }
0x11ff   :  { %2622 = vtanh.f32 %v1447_v40 }
0x1209   :  { %v2619_v9 = vpop.eup %2618 }
0x120a   :  { %v1453_v33 = vadd.f32 1.0, %v2619_v9 }
0x120b   :  { %v2621_v43 = vpop.eup %2620 }
0x120c   :  { %2624 = vrcp.f32 %v1453_v33  ;;  %v1562_v35 = vadd.f32 1.0, %v2621_v43  ;;  %v2623_v45 = vpop.eup %2622 }
0x120d   :  { %2626 = vtanh.f32 %v1558_v8 }
0x120e   :  { %2628 = vrcp.f32 %v1562_v35 }
0x1219   :  { %v2625_v42 = vpop.eup %2624 }
0x121a   :  { %v2627_v44 = vpop.eup %2626  ;;  %v1457_v46 = vsel %vm2850_vm7, %v2623_v45, %v2625_v42 }
0x121b   :  { %v2629_v47 = vpop.eup %2628  ;;  %1460 = vrot.lane.b32.xlu1 %v1457_v46, %s2726_s25  ;;  %v1458_v56 = vmul.f32 %v1457_v46, %v3209_v6 }
0x121c   :  { %v1566_v48 = vsel %vm2850_vm7, %v2627_v44, %v2629_v47 }
0x121d   :  { %1572 = vrot.lane.b32.xlu0 %v1566_v48, %s2726_s25  ;;  %v1570_v59 = vmul.f32 %v1568_v55, %v1566_v48 }
0x128d   :  { %v1461_v49 = vpop.permute.xlu1 %1460 }
0x128e   :  { %v1463_v50 = vmul.f32 %v1461_v49, %v1457_v46 }
0x128f   :  { %v1573_v52 = vpop.permute.xlu0 %1572 }
0x1290   :  { %v1575_v53 = vmul.f32 %v1573_v52, %v1566_v48  ;;  %1465 = vrot.lane.b32.xlu1 %v1463_v50, %s2727_s28 }
0x1292   :  { %1577 = vrot.lane.b32.xlu0 %v1575_v53, %s2727_s28 }
0x1302   :  { %v1466_v57 = vpop.permute.xlu1 %1465 }
0x1303   :  { %v3273_v58 = vadd.f32 %v1466_v57, %v1458_v56 }
0x1304   :  { %v1578_v60 = vpop.permute.xlu0 %1577 }
0x1305   :  { %2630 = vtanh.f32 %v3273_v58  ;;  %v3276_v61 = vadd.f32 %v1578_v60, %v1570_v59 }
0x1307   :  { %2632 = vtanh.f32 %v3276_v61  ;;  %v1788_v49 = vrot.slane %v3276_v61, 6 }
0x1312   :  { %v2631_v62 = vpop.eup %2630 }
0x1313   :  { %1471 = vrot.lane.b32.xlu1 %v2631_v62, %s2726_s25 }
0x1314   :  { %v2633_v63 = vpop.eup %2632 }
0x1315   :  { %1583 = vrot.lane.b32.xlu0 %v2633_v63, %s2726_s25 }
0x1385   :  { %v1472_v0 = vpop.permute.xlu1 %1471 }
0x1386   :  { %v3281_v2 = vmul.f32 %v1472_v0, %v1457_v46 }
0x1387   :  { %v1584_v5 = vpop.permute.xlu0 %1583 }
0x1388   :  { %v1591_v6 = vrot.slane %v3281_v2, 4  ;;  %v1586_v7 = vmul.f32 %v1584_v5, %v1566_v48 }
0x138a   :  { %1592 = vrot.lane.b32.xlu0 %v1591_v6, %s2726_s25  ;;  %1588 = vrot.lane.b32.xlu1 %v1586_v7, %s2727_s28  ;;  %v1700_v20 = vrot.slane %v1586_v7, 4 }
0x138e   :  { %1701 = vrot.lane.b32.xlu1 %v1700_v20, %s2727_s28 }
0x13fc   :  { %v1589_v10 = vpop.permute.xlu1 %1588  ;;  %v1593_v11 = vpop.permute.xlu0 %1592 }
0x13fd   :  { %v1595_v12 = vsel %vm165_vm0, %v1589_v10, %v1593_v11 }
0x13fe   :  { %v1597_v14 = vrot.slane %v1595_v12, 4 }
0x1400   :  { %v1702_v15 = vpop.permute.xlu1 %1701  ;;  %2477 = vmatmul.mubr.msk.f32.vlgmr.msra.gmra.mxu0 %vm282_vm8, %v1597_v14 }
0x1401   :  { %2488 = vmatmul.mubr.msk.f32.vlgmr.msra.gmra.mxu1 %vm165_vm0, %v1702_v15 }
0x1402   :  { %2491 = vmatpush3.msra.mxu1 %v2670_v16  ;;  %2506 = vmatprep.mubr.msk.f32.mxu1 %vm2725_vm1, %v2724_v3 }
0x1403   :  { %2492 = vmatprep.subr.mxu1 %v2724_v3 }
0x1404   :  { %2493 = vmatpush3.msra.mxu1 %v2671_v17 }
0x1405   :  { %2494 = vmatprep.subr.mxu1 %v2724_v3 }
0x1406   :  { %2495 = vmatpush3.msra.mxu1 %v2672_v21 }
0x1407   :  { %2496 = vmatprep.subr.mxu1 %v2724_v3 }
0x1408   :  { %2497 = vmatpush3.msra.mxu1 %v2673_v22 }
0x1409   :  { %2498 = vmatprep.subr.mxu1 %v2724_v3 }
0x140a   :  { %2499 = vmatpush3.msra.mxu1 %v2674_v26 }
0x140b   :  { %2500 = vmatprep.subr.mxu1 %v2724_v3 }
0x140c   :  { %2501 = vmatpush3.msra.mxu1 %v2675_v24 }
0x140d   :  { %2502 = vmatprep.subr.mxu1 %v2724_v3 }
0x140e   :  { %2503 = vmatpush3.msra.mxu1 %v2676_v18 }
0x140f   :  { %2504 = vmatprep.subr.mxu1 %v2724_v3 }
0x1410   :  { %2505 = vmatpush3.msra.mxu1 %v2677_v23 }
0x14c0   :  { %v1666_v27 = vpop.f32.mrf.mxu0 }
0x14c1   :  { %v1667_v36 = vadd.f32 %v1666_v27, %v2965_v54  ;;  %v1771_v37 = vpop.f32.mrf.mxu1  ;;  %v1958_v27 = vld [vmem:[%s3423_s6 + $0x18] sm:$0xff] }
0x14c2   :  { %v1776_v38 = vrot.slane %v1771_v37, 2  ;;  %v2478_v39 = vpop.f32.mrf.mxu0  ;;  %2509 = vmatprep.subr.mxu0 %v1958_v27 }
0x14c3   :  { %v2133_v40 = vmul.f32 -1.442695, %v1667_v36  ;;  %v2489_v30 = vpop.f32.mrf.mxu1  ;;  %2510 = vmatpush3.msra.mxu0 %v1958_v27 }
0x14c4   :  { %v1778_v28 = vadd.f32 %v2845_v19, %v1776_v38  ;;  %v1945_v30 = vsub.s32 3, %v2959_v51 }
0x14c5   :  { %2634 = vpow2.f32 %v2133_v40  ;;  %v1939_v40 = vsub.s32 2, %v2959_v51 }
0x14c6   :  { %v2135_v1 = vmul.f32 -1.442695, %v1778_v28 }
0x14c8   :  { %2636 = vpow2.f32 %v2135_v1  ;;  %v2678_v1 = vld [vmem:[%s3422_s5] sm:$0xf]  ;;  %s2728_s5 = smov 96  }
0x14c9   :  { %2638 = vtanh.f32 %v1667_v36  ;;  %v1957_v36 = vld [vmem:[%s3423_s6 + $0x10] sm:$0xff] }
0x14ca   :  { %2511 = vmatprep.subr.mxu0 %v1957_v36 }
0x14cb   :  { %2512 = vmatpush3.msra.mxu0 %v1957_v36 }
0x14d2   :  { %v2635_v4 = vpop.eup %2634 }
0x14d3   :  { %v1673_v3 = vadd.f32 1.0, %v2635_v4  ;;  %v1940_v4 = vrot.slane %v2678_v1, %v1939_v40 }
0x14d5   :  { %v2637_v8 = vpop.eup %2636  ;;  %2640 = vrcp.f32 %v1673_v3  ;;  %v1946_v3 = vrot.slane %v2678_v1, %v1945_v30 }
0x14d6   :  { %v1782_v41 = vadd.f32 1.0, %v2637_v8  ;;  %2642 = vtanh.f32 %v1778_v28  ;;  %v2639_v9 = vpop.eup %2638 }
0x14d8   :  { %2644 = vrcp.f32 %v1782_v41 }
0x14e2   :  { %v2641_v33 = vpop.eup %2640 }
0x14e3   :  { %v1677_v43 = vsel %vm2850_vm7, %v2639_v9, %v2641_v33  ;;  %v2643_v35 = vpop.eup %2642 }
0x14e4   :  { %1680 = vrot.lane.b32.xlu0 %v1677_v43, %s2726_s25  ;;  %v1678_v48 = vmul.f32 %v1677_v43, %v3273_v58 }
0x14e5   :  { %v2645_v19 = vpop.eup %2644 }
0x14e6   :  { %v1786_v45 = vsel %vm2850_vm7, %v2643_v35, %v2645_v19 }
0x14e7   :  { %1792 = vrot.lane.b32.xlu1 %v1786_v45, %s2726_s25  ;;  %v1790_v53 = vmul.f32 %v1788_v49, %v1786_v45 }
0x1556   :  { %v1681_v42 = vpop.permute.xlu0 %1680 }
0x1557   :  { %v1683_v44 = vmul.f32 %v1681_v42, %v1677_v43 }
0x1559   :  { %v1793_v46 = vpop.permute.xlu1 %1792  ;;  %1685 = vrot.lane.b32.xlu0 %v1683_v44, %s2727_s28 }
0x155a   :  { %v1795_v47 = vmul.f32 %v1793_v46, %v1786_v45 }
0x155c   :  { %1797 = vrot.lane.b32.xlu1 %v1795_v47, %s2727_s28  ;;  %v1961_v47 = vsub.s32 1, %v2959_v51 }
0x15cb   :  { %v1686_v50 = vpop.permute.xlu0 %1685 }
0x15cc   :  { %v1688_v52 = vadd.f32 %v1686_v50, %v1678_v48  ;;  %v1962_v48 = vrot.slane %v2678_v1, %v1961_v47 }
0x15ce   :  { %2646 = vtanh.f32 %v1688_v52  ;;  %v1798_v55 = vpop.permute.xlu1 %1797 }
0x15cf   :  { %v3335_v56 = vadd.f32 %v1798_v55, %v1790_v53 }
0x15d1   :  { %2648 = vtanh.f32 %v3335_v56 }
0x15db   :  { %v2647_v57 = vpop.eup %2646 }
0x15dc   :  { %1691 = vrot.lane.b32.xlu0 %v2647_v57, %s2726_s25 }
0x15de   :  { %v2649_v59 = vpop.eup %2648 }
0x15df   :  { %1803 = vrot.lane.b32.xlu1 %v2649_v59, %s2726_s25 }
0x164e   :  { %v1692_v60 = vpop.permute.xlu0 %1691 }
0x164f   :  { %v1694_v62 = vmul.f32 %v1692_v60, %v1677_v43 }
0x1651   :  { %v1811_v58 = vrot.slane %v1694_v62, 2  ;;  %v1804_v63 = vpop.permute.xlu1 %1803 }
0x1652   :  { %v1806_v61 = vmul.f32 %v1804_v63, %v1786_v45 }
0x1653   :  { %1812 = vrot.lane.b32.xlu1 %v1811_v58, %s2726_s25 }
0x1654   :  { %1808 = vrot.lane.b32.xlu0 %v1806_v61, %s2727_s28 }
0x16c5   :  { %v1813_v0 = vpop.permute.xlu1 %1812 }
0x16c6   :  { %v1809_v5 = vpop.permute.xlu0 %1808 }
0x16c7   :  { %v1815_v6 = vsel %vm165_vm0, %v1809_v5, %v1813_v0  ;;  %1921 = vst.msk [vmem:[#allocation3 - $0x6] sm:$0xc0] %vm1920_vm9, %v1809_v5 }
0x16c8   :  { %v1817_v7 = vrot.slane %v1815_v6, 6 }
0x16ca   :  { %2507 = vmatmul.mubr.msk.f32.vlgmr.msra.gmra.mxu1 %vm282_vm8, %v1817_v7 }
0x178a   :  { %v1886_v20 = vpop.f32.mrf.mxu1 }
0x178b   :  { %v1887_v10 = vadd.f32 %v1886_v20, %v2965_v54 }
0x178c   :  { %v2508_v11 = vpop.f32.mrf.mxu1 }
0x178d   :  { %v2137_v12 = vmul.f32 -1.442695, %v1887_v10 }
0x178f   :  { %2650 = vpow2.f32 %v2137_v12 }
0x1790   :  { %2652 = vtanh.f32 %v1887_v10 }
0x179c   :  { %v2651_v14 = vpop.eup %2650 }
0x179d   :  { %v1893_v15 = vadd.f32 1.0, %v2651_v14  ;;  %v2653_v16 = vpop.eup %2652 }
0x179f   :  { %2654 = vrcp.f32 %v1893_v15 }
0x17ac   :  { %v2655_v17 = vpop.eup %2654 }
0x17ad   :  { %v1897_v21 = vsel %vm2850_vm7, %v2653_v16, %v2655_v17 }
0x17ae   :  { %1900 = vrot.lane.b32.xlu0 %v1897_v21, %s2726_s25  ;;  %v1898_v54 = vmul.f32 %v1897_v21, %v1688_v52 }
0x1820   :  { %v1901_v22 = vpop.permute.xlu0 %1900 }
0x1821   :  { %v1903_v26 = vmul.f32 %v1901_v22, %v1897_v21 }
0x1823   :  { %1905 = vrot.lane.b32.xlu1 %v1903_v26, %s2727_s28 }
0x1827   :  { %386 = vrot.lane.b32.xlu1 %v2990_v34, %s2727_s28 }
0x182b   :  { %824 = vrot.lane.b32.xlu1 %v3104_v31, %s2727_s28 }
0x182f   :  { %1259 = vrot.lane.b32.xlu1 %v3217_v13, %s2727_s28 }
0x1833   :  { %1696 = vrot.lane.b32.xlu1 %v1694_v62, %s2727_s28 }
0x1895   :  { %v1906_v25 = vpop.permute.xlu1 %1905 }
0x1896   :  { %v3357_v24 = vadd.f32 %v1906_v25, %v1898_v54 }
0x1898   :  { %2656 = vtanh.f32 %v3357_v24 }
0x1899   :  { %v387_v18 = vpop.permute.xlu1 %386 }
0x189a   :  { %390 = vst.msk [vmem:[#allocation2] sm:$0x3] %vm389_vm10, %v387_v18 }
0x189d   :  { %v825_v23 = vpop.permute.xlu1 %824 }
0x189e   :  { %827 = vst.msk [vmem:[#allocation2 + $0x4] sm:$0x3] %vm389_vm10, %v825_v23 }
0x18a1   :  { %v1260_v34 = vpop.permute.xlu1 %1259 }
0x18a2   :  { %1262 = vst.msk [vmem:[#allocation2 + $0x8] sm:$0x3] %vm389_vm10, %v1260_v34 }
0x18a5   :  { %v2657_v31 = vpop.eup %2656  ;;  %v1697_v13 = vpop.permute.xlu1 %1696 }
0x18a6   :  { %1699 = vst.msk [vmem:[#allocation2 + $0xc] sm:$0x3] %vm389_vm10, %v1697_v13  ;;  %1911 = vrot.lane.b32.xlu0 %v2657_v31, %s2726_s25 }
0x18aa   :  { %604 = vrot.lane.b32.xlu0 %v3047_v32, %s2727_s28  ;;  %v1956_v32 = vld [vmem:[%s3423_s6 + $0x8] sm:$0xff] }
0x18ab   :  { %2513 = vmatprep.subr.mxu0 %v1956_v32 }
0x18ac   :  { %2514 = vmatpush3.msra.mxu0 %v1956_v32 }
0x18ae   :  { %1044 = vrot.lane.b32.xlu0 %v3161_v29, %s2727_s28  ;;  %v1955_v29 = vld [vmem:[%s3423_s6] sm:$0xff] }
0x18af   :  { %2515 = vmatprep.subr.mxu0 %v1955_v29 }
0x18b0   :  { %2516 = vmatpush3.msra.mxu0 %v1955_v29 }
0x18b2   :  { %1476 = vrot.lane.b32.xlu0 %v3281_v2, %s2727_s28 }
0x1918   :  { %v1912_v2 = vpop.permute.xlu0 %1911 }
0x1919   :  { %v1914_v37 = vmul.f32 %v1912_v2, %v1897_v21 }
0x191b   :  { %1916 = vrot.lane.b32.xlu0 %v1914_v37, %s2727_s28 }
0x191c   :  { %v605_v38 = vpop.permute.xlu0 %604 }
0x191d   :  { %607 = vst.msk [vmem:[#allocation2 + $0x2] sm:$0x3] %vm389_vm10, %v605_v38 }
0x1920   :  { %v1045_v39 = vpop.permute.xlu0 %1044 }
0x1921   :  { %1047 = vst.msk [vmem:[#allocation2 + $0x6] sm:$0x3] %vm389_vm10, %v1045_v39 }
0x1924   :  { %v1477_v28 = vpop.permute.xlu0 %1476 }
0x1925   :  { %1479 = vst.msk [vmem:[#allocation2 + $0xa] sm:$0x3] %vm389_vm10, %v1477_v28 }
0x1928   :  { %v1935_v8 = vld [vmem:[#allocation2] sm:$0xff] }
0x1929   :  { %v1941_v41 = vmul.f32 %v1940_v4, %v1935_v8 }
0x192b   :  { %v1947_v9 = vadd.f32 %v1946_v3, %v1941_v41 }
0x192d   :  { %vm1949_vm11 = vcmp.ge.f32.partialorder %v1947_v9, 0.0  ;;  %v1951_v33 = vmul.f32 0.01, %v1947_v9 }
0x192f   :  { %v1953_v43 = vsel %vm1949_vm11, %v1947_v9, %v1951_v33 }
0x1930   :  { %2517 = vmatprep.mubr.msk.f32.mxu0 %vm165_vm0, %v1953_v43 }
0x198d   :  { %v1917_v35 = vpop.permute.xlu0 %1916 }
0x198e   :  { %1919 = vst.msk [vmem:[#allocation2 + $0xe] sm:$0x3] %vm389_vm10, %v1917_v35  ;;  %1923 = vst.msk [vmem:[#allocation3 + $0x2] sm:$0x3] %vm389_vm10, %v1917_v35 }
0x1995   :  { %v1936_v19 = vld [vmem:[#allocation2 + $0x8] sm:$0xff] }
0x1996   :  { %v1942_v45 = vmul.f32 %v1940_v4, %v1936_v19 }
0x1998   :  { %v1948_v42 = vadd.f32 %v1946_v3, %v1942_v45 }
0x199a   :  { %vm1950_vm12 = vcmp.ge.f32.partialorder %v1948_v42, 0.0  ;;  %v1952_v44 = vmul.f32 0.01, %v1948_v42 }
0x199c   :  { %v1954_v46 = vsel %vm1950_vm12, %v1948_v42, %v1952_v44 }
0x199d   :  { %2518 = vmatmul.mubr.msk.f32.vlgmr.msra.gmra.mxu0 %vm165_vm0, %v1954_v46 }
0x1a5d   :  { %v2519_v49 = vpop.f32.mrf.mxu0 }
0x1a5e   :  { %v2041_v50 = vadd.f32 %v2519_v49, %v1962_v48 }
0x1a5f   :  { %v2035_v52 = vpop.f32.mrf.mxu0 }
0x1a60   :  { %v2036_v53 = vadd.f32 %v2035_v52, %v1962_v48  ;;  %2046 = vmax.xlane.f32.xlu0 %v2041_v50 }
0x1a62   :  { %2044 = vmax.xlane.f32.xlu1 %v2036_v53 }
0x1ae9   :  { %v2047_v55 = vpop.xlane.xlu0 %2046 }
0x1aea   :  { %v2049_v57 = vsub.f32 %v2041_v50, %v2047_v55 }
0x1aeb   :  { %v2045_v59 = vpop.xlane.xlu1 %2044 }
0x1aec   :  { %v2052_v60 = vmul.f32 1.442695, %v2049_v57  ;;  %v2048_v62 = vsub.f32 %v2036_v53, %v2045_v59 }
0x1aee   :  { %2658 = vpow2.f32 %v2052_v60  ;;  %v2050_v58 = vmul.f32 1.442695, %v2048_v62 }
0x1af0   :  { %2660 = vpow2.f32 %v2050_v58 }
0x1afb   :  { %v2659_v63 = vpop.eup %2658 }
0x1afc   :  { %2056 = vadd.xlane.f32.xlu1 %v2659_v63 }
0x1afd   :  { %v2661_v61 = vpop.eup %2660 }
0x1afe   :  { %2054 = vadd.xlane.f32.xlu0 %v2661_v61 }
0x1b0d   :  { %1930 = vrot.lane.b32.xlu1 %v3357_v24, %s2728_s5 }
0x1b14   :  { %1925 = vrot.lane.b32.xlu0 %v3335_v56, %s2728_s5 }
0x1b15   :  { %2690 = shalt.err (!%p2687_p4)
}
0x1b16   :  { %s2730_s18 = smov 2   ;;  %s2731_s21 = smov [#allocation5]  }
0x1b17   :  { %2077 = dma.vmem_to_hbm [thread:$0]  %s2072_s16, 64, %s3425_s8, [#allocation4], %s2727_s28, %s2727_s28, %s2730_s18  }
0x1b18   :  { %s2083_s22 = sshll.u32 %s2731_s21, 4  ;;  %s2084_s22 = int_to_ptr.vmem [resolvable:$true] %s2083_s22 }
0x1b19   :  { %s2699_s1 = scalar_lea.vmem %s2084_s22, 64  ;;  %p2704_p6 = scmp.lt.s32.totalorder %s2084_s22, %s2084_s22 }
0x1b1a   :  { %p2700_p5 = scmp.ne.s32.totalorder %s2084_s22, %s2699_s1  ;;  %p2705_p7 = scmp.lt.s32.totalorder %s2699_s1, %s2699_s1 }
0x1b1c   :  { %p2706_p8 = por %p2705_p7, %p2704_p6 }
0x1b1e   :  { %p2707_p9 = pnand %p2706_p8, %p2700_p5 }
0x1b85   :  { %v2057_v51 = vpop.xlane.xlu1 %2056 }
0x1b86   :  { %2662 = vrcp.f32 %v2057_v51 }
0x1b87   :  { %v2055_v56 = vpop.xlane.xlu0 %2054 }
0x1b88   :  { %2664 = vrcp.f32 %v2055_v56 }
0x1b89   :  { %v1931_v0 = vpop.permute.xlu1 %1930 }
0x1b8a   :  { %1934 = vst.msk [vmem:[#allocation5 + $0x2] sm:$0x3] %vm389_vm10, %v1931_v0 }
0x1b8b   :  { %v1926_v5 = vpop.permute.xlu0 %1925 }
0x1b8c   :  { %1928 = vst.msk [vmem:[#allocation5 - $0x6] sm:$0xc0] %vm1920_vm9, %v1926_v5 }
0x1b8d   :  { %2710 = shalt.err (!%p2707_p9)
}
0x1b8e   :  { %2089 = dma.vmem_to_hbm [thread:$0]  %s2084_s22, 64, %s3426_s9, [#allocation6], %s2727_s28, %s2727_s28, %s2730_s18  }
0x1b93   :  { %v2663_v6 = vpop.eup %2662 }
0x1b94   :  { %v2061_v7 = vmul.f32 %v2663_v6, %v2659_v63 }
0x1b95   :  { %v2665_v20 = vpop.eup %2664 }
0x1b96   :  { %2063 = vst [vmem:[%s3424_s7 + $0x8] sm:$0xff] %v2061_v7  ;;  %v2060_v10 = vmul.f32 %v2665_v20, %v2661_v61 }
0x1b98   :  { %2062 = vst [vmem:[%s3424_s7] sm:$0xff] %v2060_v10 }
0x1b99   :  { %2719 = dma.done.wait [#allocation4], 64  }
0x1b9a   :  { %2720 = vsyncadd [#allocation4], 4294967232 }
0x1b9b   :  { %2721 = dma.done.wait [#allocation6], 64  }
0x1b9c   :  { %2722 = vsyncadd [#allocation6], 4294967232 }
0x1b9d   :  { %2098 = vsyncpa [#allocation4], 1 }
0x1b9e   :  { %2099 = vsyncpa [#allocation6], 1 }

</bundles_post_ra>
